<compile_context>
chip_gen: v7x
topology: tpu7x:2x2x1
jax: 0.10.0
libtpu: 0.0.40
codegen_flags: <defaults>
</compile_context>

<pallas_src>
import functools

import jax
import jax.numpy as jnp
from jax import lax
from jax.experimental import pallas as pl
from jax.experimental.pallas import tpu as pltpu


def gru_forecaster_kernel(
    x_ref,        # (S, TB, F) f32, time-major batch tile
    wih_ref,      # (F, 3H)    bf16, columns in gate order (r, z, n)
    bi_ref,       # (1, 3H)    f32, [b_ir+b_hr, b_iz+b_hz, b_in] pre-folded
    whh_r_ref,    # (H, H)     bf16
    whh_z_ref,    # (H, H)     bf16
    whh_n_ref,    # (H, H)     bf16
    bhn_ref,      # (1, H)     f32
    fc1w_ref,     # (S*H, H)   bf16 (fc1.weight.T, rows grouped per timestep)
    fc1b_ref,     # (1, H)     f32
    dnnw_ref,     # (L-1, H, H) bf16
    dnnb_ref,     # (L-1, 1, H) f32
    outw_ref,     # (H, n_out)  bf16
    outb_ref,     # (1, n_out)  f32
    o_ref,        # (TB, n_out) f32
):
    S, TB, F = x_ref.shape
    H = whh_r_ref.shape[0]

    # ---- hoisted input projection: one matmul covers every timestep ----
    x2d = x_ref[...].reshape(S * TB, F).astype(jnp.bfloat16)     # rows ordered t*TB + b
    gi_all = jnp.dot(x2d, wih_ref[...], preferred_element_type=jnp.float32)
    gi_all = gi_all + bi_ref[...]
    # One-time lane split (off the per-step serial chain).
    gi_r_all = gi_all[:, 0:H]
    gi_z_all = gi_all[:, H:2 * H]
    gi_n_all = gi_all[:, 2 * H:3 * H]

    whh_r = whh_r_ref[...]
    whh_z = whh_z_ref[...]
    whh_n = whh_n_ref[...]
    bhn = bhn_ref[...]

    # ---- GRU recurrence (h0 = 0, PyTorch gate equations) + fused fc1 ----
    # S is small here so a static unrolled loop is fine; for large S switch to
    # lax.fori_loop carrying (h, acc).
    h = jnp.zeros((TB, H), jnp.float32)
    acc = jnp.zeros((TB, H), jnp.float32)
    for t in range(S):
        gi_r = gi_r_all[t * TB:(t + 1) * TB, :]
        gi_z = gi_z_all[t * TB:(t + 1) * TB, :]
        gi_n = gi_n_all[t * TB:(t + 1) * TB, :]
        h_b = h.astype(jnp.bfloat16)
        gh_r = jnp.dot(h_b, whh_r, preferred_element_type=jnp.float32)
        gh_z = jnp.dot(h_b, whh_z, preferred_element_type=jnp.float32)
        gh_n = jnp.dot(h_b, whh_n, preferred_element_type=jnp.float32) + bhn
        r = jax.nn.sigmoid(gi_r + gh_r)
        z = jax.nn.sigmoid(gi_z + gh_z)
        n = jnp.tanh(gi_n + r * gh_n)
        h = (1.0 - z) * n + z * h
        # fused fc1: feat @ W == sum_t h_t @ W[t*H:(t+1)*H, :]
        acc = acc + jnp.dot(h.astype(jnp.bfloat16),
                            fc1w_ref[t * H:(t + 1) * H, :],
                            preferred_element_type=jnp.float32)

    a = acc + fc1b_ref[...]                                      # fc1 output (TB, H)

    # ---- DNN stack: (ReLU -> Linear(H,H) [-> Dropout]) x (L-1) ----
    n_hidden_layers = dnnw_ref.shape[0]

    def dnn_body(l, a):
        a = jnp.maximum(a, 0.0).astype(jnp.bfloat16)
        return (jnp.dot(a, dnnw_ref[l], preferred_element_type=jnp.float32)
                + dnnb_ref[l])

    a = lax.fori_loop(0, n_hidden_layers, dnn_body, a)

    # ---- final ReLU -> Linear(H, n_out) ----
    a = jnp.maximum(a, 0.0).astype(jnp.bfloat16)
    out = jnp.dot(a, outw_ref[...], preferred_element_type=jnp.float32)
    o_ref[...] = (out + outb_ref[...]).astype(o_ref.dtype)


def make_params(key, n_features, n_hidden, n_outputs, sequence_len, n_deep_layers,
                weight_dtype=jnp.bfloat16):
    """Deterministic PyTorch-style uniform init, pre-laid-out for the kernel."""
    H = n_hidden
    ks = list(jax.random.split(key, 8 + 2 * n_deep_layers))
    k_iter = iter(ks)

    def unif(k, shape, fan_in):
        bound = 1.0 / float(fan_in) ** 0.5
        return jax.random.uniform(k, shape, jnp.float32, -bound, bound)

    # nn.GRU parameters (gate order: r, z, n)
    w_ih = unif(next(k_iter), (3 * H, n_features), H)
    w_hh = unif(next(k_iter), (3 * H, H), H)
    b_ih = unif(next(k_iter), (3 * H,), H)
    b_hh = unif(next(k_iter), (3 * H,), H)

    # fc1: Linear(H * sequence_len, H)
    fc1_w = unif(next(k_iter), (H, H * sequence_len), H * sequence_len)
    fc1_b = unif(next(k_iter), (H,), H * sequence_len)

    # dnn: (n_deep_layers - 1) x Linear(H, H), then Linear(H, n_outputs)
    dnn_w, dnn_b = [], []
    for _ in range(n_deep_layers - 1):
        dnn_w.append(unif(next(k_iter), (H, H), H))
        dnn_b.append(unif(next(k_iter), (H,), H))
    out_w = unif(next(k_iter), (n_outputs, H), H)
    out_b = unif(next(k_iter), (n_outputs,), H)

    # Pre-folded biases: r/z gates get b_ih + b_hh folded into the hoisted input
    # projection; for the n gate only b_in folds (b_hn stays separate because of
    # r * (W_hn h + b_hn)).
    bi_fold = jnp.concatenate([
        b_ih[0:H] + b_hh[0:H],
        b_ih[H:2 * H] + b_hh[H:2 * H],
        b_ih[2 * H:3 * H],
    ]).reshape(1, 3 * H)

    wd = weight_dtype
    return dict(
        wih=w_ih.T.astype(wd),                               # (F, 3H)
        bi_fold=bi_fold,                                     # (1, 3H) f32
        whh_r=w_hh[0:H].T.astype(wd),                        # (H, H)
        whh_z=w_hh[H:2 * H].T.astype(wd),                    # (H, H)
        whh_n=w_hh[2 * H:3 * H].T.astype(wd),                # (H, H)
        bhn=b_hh[2 * H:3 * H].reshape(1, H),                 # (1, H) f32
        fc1w=fc1_w.T.astype(wd),                             # (S*H, H)
        fc1b=fc1_b.reshape(1, H),                            # (1, H) f32
        dnnw=jnp.stack([w.T for w in dnn_w]).astype(wd),     # (L-1, H, H)
        dnnb=jnp.stack([b.reshape(1, H) for b in dnn_b]),    # (L-1, 1, H) f32
        outw=out_w.T.astype(wd),                             # (H, n_out)
        outb=out_b.reshape(1, n_outputs),                    # (1, n_out) f32
    )


@functools.partial(jax.jit, static_argnames=("n_hidden",))
def gru_forecaster(x, params, *, n_hidden):
    B, S, F = x.shape
    n_out = params["outw"].shape[1]

    # Time-major layout so the hoisted projection sees contiguous per-timestep rows.
    x_tm = jnp.transpose(x, (1, 0, 2))                       # (S, B, F)

    # Batch tile: degenerate grid at small B; for B >= 16 (multiple of 8) this gives
    # a parallel grid that pipelines x / out and uses both TensorCores on v7x.
    TB = 8 if (B >= 16 and B % 8 == 0) else B
    grid = (B // TB,)

    def whole(arr):
        nd = arr.ndim
        return pl.BlockSpec(arr.shape, lambda i, _nd=nd: (0,) * _nd)

    in_specs = [
        pl.BlockSpec((S, TB, F), lambda i: (0, i, 0)),       # x tile over batch
        whole(params["wih"]),
        whole(params["bi_fold"]),
        whole(params["whh_r"]),
        whole(params["whh_z"]),
        whole(params["whh_n"]),
        whole(params["bhn"]),
        whole(params["fc1w"]),
        whole(params["fc1b"]),
        whole(params["dnnw"]),
        whole(params["dnnb"]),
        whole(params["outw"]),
        whole(params["outb"]),
    ]

    return pl.pallas_call(
        gru_forecaster_kernel,
        out_shape=jax.ShapeDtypeStruct((B, n_out), jnp.float32),
        grid=grid,
        in_specs=in_specs,
        out_specs=pl.BlockSpec((TB, n_out), lambda i: (i, 0)),
        compiler_params=pltpu.CompilerParams(
            dimension_semantics=("parallel",),
            vmem_limit_bytes=48 * 1024 * 1024,
        ),
    )(
        x_tm,
        params["wih"], params["bi_fold"],
        params["whh_r"], params["whh_z"], params["whh_n"], params["bhn"],
        params["fc1w"], params["fc1b"],
        params["dnnw"], params["dnnb"],
        params["outw"], params["outb"],
    )


def reference_forward(x, params):
    """Pure-JAX reference with identical math (bf16 weights, f32 accumulate)."""
    B, S, F = x.shape
    H = params["whh_r"].shape[0]
    bf16, f32 = jnp.bfloat16, jnp.float32
    h = jnp.zeros((B, H), f32)
    outs = []
    for t in range(S):
        gi = jnp.dot(x[:, t, :].astype(bf16), params["wih"],
                     preferred_element_type=f32) + params["bi_fold"]
        hb = h.astype(bf16)
        gh_r = jnp.dot(hb, params["whh_r"], preferred_element_type=f32)
        gh_z = jnp.dot(hb, params["whh_z"], preferred_element_type=f32)
        gh_n = jnp.dot(hb, params["whh_n"], preferred_element_type=f32) + params["bhn"]
        r = jax.nn.sigmoid(gi[:, 0:H] + gh_r)
        z = jax.nn.sigmoid(gi[:, H:2 * H] + gh_z)
        n = jnp.tanh(gi[:, 2 * H:3 * H] + r * gh_n)
        h = (1.0 - z) * n + z * h
        outs.append(h)
    feat = jnp.concatenate(outs, axis=-1)                    # (B, S*H), time-major per row
    a = jnp.dot(feat.astype(bf16), params["fc1w"],
                preferred_element_type=f32) + params["fc1b"]
    for l in range(params["dnnw"].shape[0]):
        a = jnp.dot(jnp.maximum(a, 0.0).astype(bf16), params["dnnw"][l],
                    preferred_element_type=f32) + params["dnnb"][l]
    a = jnp.maximum(a, 0.0).astype(bf16)
    return jnp.dot(a, params["outw"], preferred_element_type=f32) + params["outb"]


if __name__ == "__main__":
    # Small shapes consistent with the module's forward.
    B, S, F = 2, 8, 4          # batch, sequence_len, n_features
    H = 32                     # n_hidden
    n_outputs = 1
    n_deep_layers = 10

    key = jax.random.PRNGKey(0)
    k_x, k_p = jax.random.split(key)
    x = jax.random.normal(k_x, (B, S, F), dtype=jnp.float32)
    params = make_params(k_p, F, H, n_outputs, S, n_deep_layers)

    out = gru_forecaster(x, params, n_hidden=H)
    out = jax.block_until_ready(out)

    ref = reference_forward(x, params)
    assert out.shape == (B, n_outputs)
    assert jnp.allclose(out, ref, atol=2e-3, rtol=2e-3), (out, ref)

    print("KERNEL_OK")
</pallas_src>

<mosaic_0001>
module attributes {stable_mosaic.version = 11 : i64} {
  func.func @gru_forecaster_kernel(%arg0: i32, %arg1: memref<8x2x4xf32, #tpu.memory_space<vmem>>, %arg2: memref<4x96xbf16, #tpu.memory_space<vmem>>, %arg3: memref<1x96xf32, #tpu.memory_space<vmem>>, %arg4: memref<32x32xbf16, #tpu.memory_space<vmem>>, %arg5: memref<32x32xbf16, #tpu.memory_space<vmem>>, %arg6: memref<32x32xbf16, #tpu.memory_space<vmem>>, %arg7: memref<1x32xf32, #tpu.memory_space<vmem>>, %arg8: memref<256x32xbf16, #tpu.memory_space<vmem>>, %arg9: memref<1x32xf32, #tpu.memory_space<vmem>>, %arg10: memref<9x32x32xbf16, #tpu.memory_space<vmem>>, %arg11: memref<9x1x32xf32, #tpu.memory_space<vmem>>, %arg12: memref<32x1xbf16, #tpu.memory_space<vmem>>, %arg13: memref<1x1xf32, #tpu.memory_space<vmem>>, %arg14: memref<2x1xf32, #tpu.memory_space<vmem>>) attributes {dimension_semantics = [#tpu.dimension_semantics<parallel>], iteration_bounds = array<i64: 1>, scalar_prefetch = 0 : i64, scratch_operands = 0 : i64, tpu.core_type = #tpu.core_type<tc>, window_params = [{transform_indices = @transform_0, window_bounds = array<i64: 8, 2, 4>}, {pipeline_mode = #tpu.pipeline_mode<synchronous>, transform_indices = @transform_1, window_bounds = array<i64: 4, 96>}, {pipeline_mode = #tpu.pipeline_mode<synchronous>, transform_indices = @transform_2, window_bounds = array<i64: 1, 96>}, {pipeline_mode = #tpu.pipeline_mode<synchronous>, transform_indices = @transform_3, window_bounds = array<i64: 32, 32>}, {pipeline_mode = #tpu.pipeline_mode<synchronous>, transform_indices = @transform_4, window_bounds = array<i64: 32, 32>}, {pipeline_mode = #tpu.pipeline_mode<synchronous>, transform_indices = @transform_5, window_bounds = array<i64: 32, 32>}, {pipeline_mode = #tpu.pipeline_mode<synchronous>, transform_indices = @transform_6, window_bounds = array<i64: 1, 32>}, {pipeline_mode = #tpu.pipeline_mode<synchronous>, transform_indices = @transform_7, window_bounds = array<i64: 256, 32>}, {pipeline_mode = #tpu.pipeline_mode<synchronous>, transform_indices = @transform_8, window_bounds = array<i64: 1, 32>}, {pipeline_mode = #tpu.pipeline_mode<synchronous>, transform_indices = @transform_9, window_bounds = array<i64: 9, 32, 32>}, {pipeline_mode = #tpu.pipeline_mode<synchronous>, transform_indices = @transform_10, window_bounds = array<i64: 9, 1, 32>}, {pipeline_mode = #tpu.pipeline_mode<synchronous>, transform_indices = @transform_11, window_bounds = array<i64: 32, 1>}, {pipeline_mode = #tpu.pipeline_mode<synchronous>, transform_indices = @transform_12, window_bounds = array<i64: 1, 1>}, {transform_indices = @transform_13, window_bounds = array<i64: 2, 1>}]} {
    %c0 = arith.constant 0 : index
    %c0_0 = arith.constant 0 : index
    %c0_1 = arith.constant 0 : index
    %0 = vector.load %arg1[%c0, %c0_0, %c0_1] : memref<8x2x4xf32, #tpu.memory_space<vmem>>, vector<8x2x4xf32>
    %1 = vector.shape_cast %0 : vector<8x2x4xf32> to vector<16x4xf32>
    %2 = arith.truncf %1 : vector<16x4xf32> to vector<16x4xbf16>
    %c0_2 = arith.constant 0 : index
    %c0_3 = arith.constant 0 : index
    %3 = vector.load %arg2[%c0_2, %c0_3] : memref<4x96xbf16, #tpu.memory_space<vmem>>, vector<4x96xbf16>
    %cst = arith.constant dense<0.000000e+00> : vector<16x96xf32>
    %4 = tpu.matmul %2, %3, %cst {dimension_numbers = #tpu.dot_dimension_numbers<[1], [0], [0], [1], [0, 0, 1, 1], [], []>} : vector<16x4xbf16>, vector<4x96xbf16>, vector<16x96xf32> -> vector<16x96xf32>
    %c0_4 = arith.constant 0 : index
    %c0_5 = arith.constant 0 : index
    %5 = vector.load %arg3[%c0_4, %c0_5] : memref<1x96xf32, #tpu.memory_space<vmem>>, vector<1x96xf32>
    %6 = vector.broadcast %5 : vector<1x96xf32> to vector<16x96xf32>
    %7 = arith.addf %4, %6 : vector<16x96xf32>
    %8 = vector.extract_strided_slice %7 {offsets = [0, 0], sizes = [16, 32], strides = [1, 1]} : vector<16x96xf32> to vector<16x32xf32>
    %9 = vector.extract_strided_slice %7 {offsets = [0, 32], sizes = [16, 32], strides = [1, 1]} : vector<16x96xf32> to vector<16x32xf32>
    %10 = vector.extract_strided_slice %7 {offsets = [0, 64], sizes = [16, 32], strides = [1, 1]} : vector<16x96xf32> to vector<16x32xf32>
    %c0_6 = arith.constant 0 : index
    %c0_7 = arith.constant 0 : index
    %11 = vector.load %arg4[%c0_6, %c0_7] : memref<32x32xbf16, #tpu.memory_space<vmem>>, vector<32x32xbf16>
    %c0_8 = arith.constant 0 : index
    %c0_9 = arith.constant 0 : index
    %12 = vector.load %arg5[%c0_8, %c0_9] : memref<32x32xbf16, #tpu.memory_space<vmem>>, vector<32x32xbf16>
    %c0_10 = arith.constant 0 : index
    %c0_11 = arith.constant 0 : index
    %13 = vector.load %arg6[%c0_10, %c0_11] : memref<32x32xbf16, #tpu.memory_space<vmem>>, vector<32x32xbf16>
    %c0_12 = arith.constant 0 : index
    %c0_13 = arith.constant 0 : index
    %14 = vector.load %arg7[%c0_12, %c0_13] : memref<1x32xf32, #tpu.memory_space<vmem>>, vector<1x32xf32>
    %cst_14 = arith.constant 0.000000e+00 : f32
    %15 = vector.broadcast %cst_14 : f32 to vector<2x32xf32>
    %cst_15 = arith.constant 0.000000e+00 : f32
    %16 = vector.broadcast %cst_15 : f32 to vector<2x32xf32>
    %17 = vector.extract_strided_slice %8 {offsets = [0, 0], sizes = [2, 32], strides = [1, 1]} : vector<16x32xf32> to vector<2x32xf32>
    %18 = vector.extract_strided_slice %9 {offsets = [0, 0], sizes = [2, 32], strides = [1, 1]} : vector<16x32xf32> to vector<2x32xf32>
    %19 = vector.extract_strided_slice %10 {offsets = [0, 0], sizes = [2, 32], strides = [1, 1]} : vector<16x32xf32> to vector<2x32xf32>
    %20 = arith.truncf %15 : vector<2x32xf32> to vector<2x32xbf16>
    %cst_16 = arith.constant dense<0.000000e+00> : vector<2x32xf32>
    %21 = tpu.matmul %20, %11, %cst_16 {dimension_numbers = #tpu.dot_dimension_numbers<[1], [0], [0], [1], [0, 0, 1, 1], [], []>} : vector<2x32xbf16>, vector<32x32xbf16>, vector<2x32xf32> -> vector<2x32xf32>
    %cst_17 = arith.constant dense<0.000000e+00> : vector<2x32xf32>
    %22 = tpu.matmul %20, %12, %cst_17 {dimension_numbers = #tpu.dot_dimension_numbers<[1], [0], [0], [1], [0, 0, 1, 1], [], []>} : vector<2x32xbf16>, vector<32x32xbf16>, vector<2x32xf32> -> vector<2x32xf32>
    %cst_18 = arith.constant dense<0.000000e+00> : vector<2x32xf32>
    %23 = tpu.matmul %20, %13, %cst_18 {dimension_numbers = #tpu.dot_dimension_numbers<[1], [0], [0], [1], [0, 0, 1, 1], [], []>} : vector<2x32xbf16>, vector<32x32xbf16>, vector<2x32xf32> -> vector<2x32xf32>
    %24 = vector.broadcast %14 : vector<1x32xf32> to vector<2x32xf32>
    %25 = arith.addf %23, %24 : vector<2x32xf32>
    %26 = arith.addf %17, %21 : vector<2x32xf32>
    %27 = arith.negf %26 : vector<2x32xf32>
    %28 = math.exp %27 : vector<2x32xf32>
    %cst_19 = arith.constant 1.000000e+00 : f32
    %29 = vector.broadcast %cst_19 : f32 to vector<2x32xf32>
    %30 = arith.addf %29, %28 : vector<2x32xf32>
    %31 = arith.divf %29, %30 : vector<2x32xf32>
    %32 = arith.addf %18, %22 : vector<2x32xf32>
    %33 = arith.negf %32 : vector<2x32xf32>
    %34 = math.exp %33 : vector<2x32xf32>
    %cst_20 = arith.constant 1.000000e+00 : f32
    %35 = vector.broadcast %cst_20 : f32 to vector<2x32xf32>
    %36 = arith.addf %35, %34 : vector<2x32xf32>
    %37 = arith.divf %35, %36 : vector<2x32xf32>
    %38 = arith.mulf %31, %25 : vector<2x32xf32>
    %39 = arith.addf %19, %38 : vector<2x32xf32>
    %40 = math.tanh %39 : vector<2x32xf32>
    %cst_21 = arith.constant 1.000000e+00 : f32
    %41 = vector.broadcast %cst_21 : f32 to vector<2x32xf32>
    %42 = arith.subf %41, %37 : vector<2x32xf32>
    %43 = arith.mulf %42, %40 : vector<2x32xf32>
    %44 = arith.mulf %37, %15 : vector<2x32xf32>
    %45 = arith.addf %43, %44 : vector<2x32xf32>
    %46 = arith.truncf %45 : vector<2x32xf32> to vector<2x32xbf16>
    %c0_22 = arith.constant 0 : index
    %c0_23 = arith.constant 0 : index
    %47 = vector.load %arg8[%c0_22, %c0_23] : memref<256x32xbf16, #tpu.memory_space<vmem>>, vector<32x32xbf16>
    %cst_24 = arith.constant dense<0.000000e+00> : vector<2x32xf32>
    %48 = tpu.matmul %46, %47, %cst_24 {dimension_numbers = #tpu.dot_dimension_numbers<[1], [0], [0], [1], [0, 0, 1, 1], [], []>} : vector<2x32xbf16>, vector<32x32xbf16>, vector<2x32xf32> -> vector<2x32xf32>
    %49 = arith.addf %16, %48 : vector<2x32xf32>
    %50 = vector.extract_strided_slice %8 {offsets = [2, 0], sizes = [2, 32], strides = [1, 1]} : vector<16x32xf32> to vector<2x32xf32>
    %51 = vector.extract_strided_slice %9 {offsets = [2, 0], sizes = [2, 32], strides = [1, 1]} : vector<16x32xf32> to vector<2x32xf32>
    %52 = vector.extract_strided_slice %10 {offsets = [2, 0], sizes = [2, 32], strides = [1, 1]} : vector<16x32xf32> to vector<2x32xf32>
    %53 = arith.truncf %45 : vector<2x32xf32> to vector<2x32xbf16>
    %cst_25 = arith.constant dense<0.000000e+00> : vector<2x32xf32>
    %54 = tpu.matmul %53, %11, %cst_25 {dimension_numbers = #tpu.dot_dimension_numbers<[1], [0], [0], [1], [0, 0, 1, 1], [], []>} : vector<2x32xbf16>, vector<32x32xbf16>, vector<2x32xf32> -> vector<2x32xf32>
    %cst_26 = arith.constant dense<0.000000e+00> : vector<2x32xf32>
    %55 = tpu.matmul %53, %12, %cst_26 {dimension_numbers = #tpu.dot_dimension_numbers<[1], [0], [0], [1], [0, 0, 1, 1], [], []>} : vector<2x32xbf16>, vector<32x32xbf16>, vector<2x32xf32> -> vector<2x32xf32>
    %cst_27 = arith.constant dense<0.000000e+00> : vector<2x32xf32>
    %56 = tpu.matmul %53, %13, %cst_27 {dimension_numbers = #tpu.dot_dimension_numbers<[1], [0], [0], [1], [0, 0, 1, 1], [], []>} : vector<2x32xbf16>, vector<32x32xbf16>, vector<2x32xf32> -> vector<2x32xf32>
    %57 = vector.broadcast %14 : vector<1x32xf32> to vector<2x32xf32>
    %58 = arith.addf %56, %57 : vector<2x32xf32>
    %59 = arith.addf %50, %54 : vector<2x32xf32>
    %60 = arith.negf %59 : vector<2x32xf32>
    %61 = math.exp %60 : vector<2x32xf32>
    %cst_28 = arith.constant 1.000000e+00 : f32
    %62 = vector.broadcast %cst_28 : f32 to vector<2x32xf32>
    %63 = arith.addf %62, %61 : vector<2x32xf32>
    %64 = arith.divf %62, %63 : vector<2x32xf32>
    %65 = arith.addf %51, %55 : vector<2x32xf32>
    %66 = arith.negf %65 : vector<2x32xf32>
    %67 = math.exp %66 : vector<2x32xf32>
    %cst_29 = arith.constant 1.000000e+00 : f32
    %68 = vector.broadcast %cst_29 : f32 to vector<2x32xf32>
    %69 = arith.addf %68, %67 : vector<2x32xf32>
    %70 = arith.divf %68, %69 : vector<2x32xf32>
    %71 = arith.mulf %64, %58 : vector<2x32xf32>
    %72 = arith.addf %52, %71 : vector<2x32xf32>
    %73 = math.tanh %72 : vector<2x32xf32>
    %cst_30 = arith.constant 1.000000e+00 : f32
    %74 = vector.broadcast %cst_30 : f32 to vector<2x32xf32>
    %75 = arith.subf %74, %70 : vector<2x32xf32>
    %76 = arith.mulf %75, %73 : vector<2x32xf32>
    %77 = arith.mulf %70, %45 : vector<2x32xf32>
    %78 = arith.addf %76, %77 : vector<2x32xf32>
    %79 = arith.truncf %78 : vector<2x32xf32> to vector<2x32xbf16>
    %c32 = arith.constant 32 : index
    %c0_31 = arith.constant 0 : index
    %80 = vector.load %arg8[%c32, %c0_31] : memref<256x32xbf16, #tpu.memory_space<vmem>>, vector<32x32xbf16>
    %cst_32 = arith.constant dense<0.000000e+00> : vector<2x32xf32>
    %81 = tpu.matmul %79, %80, %cst_32 {dimension_numbers = #tpu.dot_dimension_numbers<[1], [0], [0], [1], [0, 0, 1, 1], [], []>} : vector<2x32xbf16>, vector<32x32xbf16>, vector<2x32xf32> -> vector<2x32xf32>
    %82 = arith.addf %49, %81 : vector<2x32xf32>
    %83 = vector.extract_strided_slice %8 {offsets = [4, 0], sizes = [2, 32], strides = [1, 1]} : vector<16x32xf32> to vector<2x32xf32>
    %84 = vector.extract_strided_slice %9 {offsets = [4, 0], sizes = [2, 32], strides = [1, 1]} : vector<16x32xf32> to vector<2x32xf32>
    %85 = vector.extract_strided_slice %10 {offsets = [4, 0], sizes = [2, 32], strides = [1, 1]} : vector<16x32xf32> to vector<2x32xf32>
    %86 = arith.truncf %78 : vector<2x32xf32> to vector<2x32xbf16>
    %cst_33 = arith.constant dense<0.000000e+00> : vector<2x32xf32>
    %87 = tpu.matmul %86, %11, %cst_33 {dimension_numbers = #tpu.dot_dimension_numbers<[1], [0], [0], [1], [0, 0, 1, 1], [], []>} : vector<2x32xbf16>, vector<32x32xbf16>, vector<2x32xf32> -> vector<2x32xf32>
    %cst_34 = arith.constant dense<0.000000e+00> : vector<2x32xf32>
    %88 = tpu.matmul %86, %12, %cst_34 {dimension_numbers = #tpu.dot_dimension_numbers<[1], [0], [0], [1], [0, 0, 1, 1], [], []>} : vector<2x32xbf16>, vector<32x32xbf16>, vector<2x32xf32> -> vector<2x32xf32>
    %cst_35 = arith.constant dense<0.000000e+00> : vector<2x32xf32>
    %89 = tpu.matmul %86, %13, %cst_35 {dimension_numbers = #tpu.dot_dimension_numbers<[1], [0], [0], [1], [0, 0, 1, 1], [], []>} : vector<2x32xbf16>, vector<32x32xbf16>, vector<2x32xf32> -> vector<2x32xf32>
    %90 = vector.broadcast %14 : vector<1x32xf32> to vector<2x32xf32>
    %91 = arith.addf %89, %90 : vector<2x32xf32>
    %92 = arith.addf %83, %87 : vector<2x32xf32>
    %93 = arith.negf %92 : vector<2x32xf32>
    %94 = math.exp %93 : vector<2x32xf32>
    %cst_36 = arith.constant 1.000000e+00 : f32
    %95 = vector.broadcast %cst_36 : f32 to vector<2x32xf32>
    %96 = arith.addf %95, %94 : vector<2x32xf32>
    %97 = arith.divf %95, %96 : vector<2x32xf32>
    %98 = arith.addf %84, %88 : vector<2x32xf32>
    %99 = arith.negf %98 : vector<2x32xf32>
    %100 = math.exp %99 : vector<2x32xf32>
    %cst_37 = arith.constant 1.000000e+00 : f32
    %101 = vector.broadcast %cst_37 : f32 to vector<2x32xf32>
    %102 = arith.addf %101, %100 : vector<2x32xf32>
    %103 = arith.divf %101, %102 : vector<2x32xf32>
    %104 = arith.mulf %97, %91 : vector<2x32xf32>
    %105 = arith.addf %85, %104 : vector<2x32xf32>
    %106 = math.tanh %105 : vector<2x32xf32>
    %cst_38 = arith.constant 1.000000e+00 : f32
    %107 = vector.broadcast %cst_38 : f32 to vector<2x32xf32>
    %108 = arith.subf %107, %103 : vector<2x32xf32>
    %109 = arith.mulf %108, %106 : vector<2x32xf32>
    %110 = arith.mulf %103, %78 : vector<2x32xf32>
    %111 = arith.addf %109, %110 : vector<2x32xf32>
    %112 = arith.truncf %111 : vector<2x32xf32> to vector<2x32xbf16>
    %c64 = arith.constant 64 : index
    %c0_39 = arith.constant 0 : index
    %113 = vector.load %arg8[%c64, %c0_39] : memref<256x32xbf16, #tpu.memory_space<vmem>>, vector<32x32xbf16>
    %cst_40 = arith.constant dense<0.000000e+00> : vector<2x32xf32>
    %114 = tpu.matmul %112, %113, %cst_40 {dimension_numbers = #tpu.dot_dimension_numbers<[1], [0], [0], [1], [0, 0, 1, 1], [], []>} : vector<2x32xbf16>, vector<32x32xbf16>, vector<2x32xf32> -> vector<2x32xf32>
    %115 = arith.addf %82, %114 : vector<2x32xf32>
    %116 = vector.extract_strided_slice %8 {offsets = [6, 0], sizes = [2, 32], strides = [1, 1]} : vector<16x32xf32> to vector<2x32xf32>
    %117 = vector.extract_strided_slice %9 {offsets = [6, 0], sizes = [2, 32], strides = [1, 1]} : vector<16x32xf32> to vector<2x32xf32>
    %118 = vector.extract_strided_slice %10 {offsets = [6, 0], sizes = [2, 32], strides = [1, 1]} : vector<16x32xf32> to vector<2x32xf32>
    %119 = arith.truncf %111 : vector<2x32xf32> to vector<2x32xbf16>
    %cst_41 = arith.constant dense<0.000000e+00> : vector<2x32xf32>
    %120 = tpu.matmul %119, %11, %cst_41 {dimension_numbers = #tpu.dot_dimension_numbers<[1], [0], [0], [1], [0, 0, 1, 1], [], []>} : vector<2x32xbf16>, vector<32x32xbf16>, vector<2x32xf32> -> vector<2x32xf32>
    %cst_42 = arith.constant dense<0.000000e+00> : vector<2x32xf32>
    %121 = tpu.matmul %119, %12, %cst_42 {dimension_numbers = #tpu.dot_dimension_numbers<[1], [0], [0], [1], [0, 0, 1, 1], [], []>} : vector<2x32xbf16>, vector<32x32xbf16>, vector<2x32xf32> -> vector<2x32xf32>
    %cst_43 = arith.constant dense<0.000000e+00> : vector<2x32xf32>
    %122 = tpu.matmul %119, %13, %cst_43 {dimension_numbers = #tpu.dot_dimension_numbers<[1], [0], [0], [1], [0, 0, 1, 1], [], []>} : vector<2x32xbf16>, vector<32x32xbf16>, vector<2x32xf32> -> vector<2x32xf32>
    %123 = vector.broadcast %14 : vector<1x32xf32> to vector<2x32xf32>
    %124 = arith.addf %122, %123 : vector<2x32xf32>
    %125 = arith.addf %116, %120 : vector<2x32xf32>
    %126 = arith.negf %125 : vector<2x32xf32>
    %127 = math.exp %126 : vector<2x32xf32>
    %cst_44 = arith.constant 1.000000e+00 : f32
    %128 = vector.broadcast %cst_44 : f32 to vector<2x32xf32>
    %129 = arith.addf %128, %127 : vector<2x32xf32>
    %130 = arith.divf %128, %129 : vector<2x32xf32>
    %131 = arith.addf %117, %121 : vector<2x32xf32>
    %132 = arith.negf %131 : vector<2x32xf32>
    %133 = math.exp %132 : vector<2x32xf32>
    %cst_45 = arith.constant 1.000000e+00 : f32
    %134 = vector.broadcast %cst_45 : f32 to vector<2x32xf32>
    %135 = arith.addf %134, %133 : vector<2x32xf32>
    %136 = arith.divf %134, %135 : vector<2x32xf32>
    %137 = arith.mulf %130, %124 : vector<2x32xf32>
    %138 = arith.addf %118, %137 : vector<2x32xf32>
    %139 = math.tanh %138 : vector<2x32xf32>
    %cst_46 = arith.constant 1.000000e+00 : f32
    %140 = vector.broadcast %cst_46 : f32 to vector<2x32xf32>
    %141 = arith.subf %140, %136 : vector<2x32xf32>
    %142 = arith.mulf %141, %139 : vector<2x32xf32>
    %143 = arith.mulf %136, %111 : vector<2x32xf32>
    %144 = arith.addf %142, %143 : vector<2x32xf32>
    %145 = arith.truncf %144 : vector<2x32xf32> to vector<2x32xbf16>
    %c96 = arith.constant 96 : index
    %c0_47 = arith.constant 0 : index
    %146 = vector.load %arg8[%c96, %c0_47] : memref<256x32xbf16, #tpu.memory_space<vmem>>, vector<32x32xbf16>
    %cst_48 = arith.constant dense<0.000000e+00> : vector<2x32xf32>
    %147 = tpu.matmul %145, %146, %cst_48 {dimension_numbers = #tpu.dot_dimension_numbers<[1], [0], [0], [1], [0, 0, 1, 1], [], []>} : vector<2x32xbf16>, vector<32x32xbf16>, vector<2x32xf32> -> vector<2x32xf32>
    %148 = arith.addf %115, %147 : vector<2x32xf32>
    %149 = vector.extract_strided_slice %8 {offsets = [8, 0], sizes = [2, 32], strides = [1, 1]} : vector<16x32xf32> to vector<2x32xf32>
    %150 = vector.extract_strided_slice %9 {offsets = [8, 0], sizes = [2, 32], strides = [1, 1]} : vector<16x32xf32> to vector<2x32xf32>
    %151 = vector.extract_strided_slice %10 {offsets = [8, 0], sizes = [2, 32], strides = [1, 1]} : vector<16x32xf32> to vector<2x32xf32>
    %152 = arith.truncf %144 : vector<2x32xf32> to vector<2x32xbf16>
    %cst_49 = arith.constant dense<0.000000e+00> : vector<2x32xf32>
    %153 = tpu.matmul %152, %11, %cst_49 {dimension_numbers = #tpu.dot_dimension_numbers<[1], [0], [0], [1], [0, 0, 1, 1], [], []>} : vector<2x32xbf16>, vector<32x32xbf16>, vector<2x32xf32> -> vector<2x32xf32>
    %cst_50 = arith.constant dense<0.000000e+00> : vector<2x32xf32>
    %154 = tpu.matmul %152, %12, %cst_50 {dimension_numbers = #tpu.dot_dimension_numbers<[1], [0], [0], [1], [0, 0, 1, 1], [], []>} : vector<2x32xbf16>, vector<32x32xbf16>, vector<2x32xf32> -> vector<2x32xf32>
    %cst_51 = arith.constant dense<0.000000e+00> : vector<2x32xf32>
    %155 = tpu.matmul %152, %13, %cst_51 {dimension_numbers = #tpu.dot_dimension_numbers<[1], [0], [0], [1], [0, 0, 1, 1], [], []>} : vector<2x32xbf16>, vector<32x32xbf16>, vector<2x32xf32> -> vector<2x32xf32>
    %156 = vector.broadcast %14 : vector<1x32xf32> to vector<2x32xf32>
    %157 = arith.addf %155, %156 : vector<2x32xf32>
    %158 = arith.addf %149, %153 : vector<2x32xf32>
    %159 = arith.negf %158 : vector<2x32xf32>
    %160 = math.exp %159 : vector<2x32xf32>
    %cst_52 = arith.constant 1.000000e+00 : f32
    %161 = vector.broadcast %cst_52 : f32 to vector<2x32xf32>
    %162 = arith.addf %161, %160 : vector<2x32xf32>
    %163 = arith.divf %161, %162 : vector<2x32xf32>
    %164 = arith.addf %150, %154 : vector<2x32xf32>
    %165 = arith.negf %164 : vector<2x32xf32>
    %166 = math.exp %165 : vector<2x32xf32>
    %cst_53 = arith.constant 1.000000e+00 : f32
    %167 = vector.broadcast %cst_53 : f32 to vector<2x32xf32>
    %168 = arith.addf %167, %166 : vector<2x32xf32>
    %169 = arith.divf %167, %168 : vector<2x32xf32>
    %170 = arith.mulf %163, %157 : vector<2x32xf32>
    %171 = arith.addf %151, %170 : vector<2x32xf32>
    %172 = math.tanh %171 : vector<2x32xf32>
    %cst_54 = arith.constant 1.000000e+00 : f32
    %173 = vector.broadcast %cst_54 : f32 to vector<2x32xf32>
    %174 = arith.subf %173, %169 : vector<2x32xf32>
    %175 = arith.mulf %174, %172 : vector<2x32xf32>
    %176 = arith.mulf %169, %144 : vector<2x32xf32>
    %177 = arith.addf %175, %176 : vector<2x32xf32>
    %178 = arith.truncf %177 : vector<2x32xf32> to vector<2x32xbf16>
    %c128 = arith.constant 128 : index
    %c0_55 = arith.constant 0 : index
    %179 = vector.load %arg8[%c128, %c0_55] : memref<256x32xbf16, #tpu.memory_space<vmem>>, vector<32x32xbf16>
    %cst_56 = arith.constant dense<0.000000e+00> : vector<2x32xf32>
    %180 = tpu.matmul %178, %179, %cst_56 {dimension_numbers = #tpu.dot_dimension_numbers<[1], [0], [0], [1], [0, 0, 1, 1], [], []>} : vector<2x32xbf16>, vector<32x32xbf16>, vector<2x32xf32> -> vector<2x32xf32>
    %181 = arith.addf %148, %180 : vector<2x32xf32>
    %182 = vector.extract_strided_slice %8 {offsets = [10, 0], sizes = [2, 32], strides = [1, 1]} : vector<16x32xf32> to vector<2x32xf32>
    %183 = vector.extract_strided_slice %9 {offsets = [10, 0], sizes = [2, 32], strides = [1, 1]} : vector<16x32xf32> to vector<2x32xf32>
    %184 = vector.extract_strided_slice %10 {offsets = [10, 0], sizes = [2, 32], strides = [1, 1]} : vector<16x32xf32> to vector<2x32xf32>
    %185 = arith.truncf %177 : vector<2x32xf32> to vector<2x32xbf16>
    %cst_57 = arith.constant dense<0.000000e+00> : vector<2x32xf32>
    %186 = tpu.matmul %185, %11, %cst_57 {dimension_numbers = #tpu.dot_dimension_numbers<[1], [0], [0], [1], [0, 0, 1, 1], [], []>} : vector<2x32xbf16>, vector<32x32xbf16>, vector<2x32xf32> -> vector<2x32xf32>
    %cst_58 = arith.constant dense<0.000000e+00> : vector<2x32xf32>
    %187 = tpu.matmul %185, %12, %cst_58 {dimension_numbers = #tpu.dot_dimension_numbers<[1], [0], [0], [1], [0, 0, 1, 1], [], []>} : vector<2x32xbf16>, vector<32x32xbf16>, vector<2x32xf32> -> vector<2x32xf32>
    %cst_59 = arith.constant dense<0.000000e+00> : vector<2x32xf32>
    %188 = tpu.matmul %185, %13, %cst_59 {dimension_numbers = #tpu.dot_dimension_numbers<[1], [0], [0], [1], [0, 0, 1, 1], [], []>} : vector<2x32xbf16>, vector<32x32xbf16>, vector<2x32xf32> -> vector<2x32xf32>
    %189 = vector.broadcast %14 : vector<1x32xf32> to vector<2x32xf32>
    %190 = arith.addf %188, %189 : vector<2x32xf32>
    %191 = arith.addf %182, %186 : vector<2x32xf32>
    %192 = arith.negf %191 : vector<2x32xf32>
    %193 = math.exp %192 : vector<2x32xf32>
    %cst_60 = arith.constant 1.000000e+00 : f32
    %194 = vector.broadcast %cst_60 : f32 to vector<2x32xf32>
    %195 = arith.addf %194, %193 : vector<2x32xf32>
    %196 = arith.divf %194, %195 : vector<2x32xf32>
    %197 = arith.addf %183, %187 : vector<2x32xf32>
    %198 = arith.negf %197 : vector<2x32xf32>
    %199 = math.exp %198 : vector<2x32xf32>
    %cst_61 = arith.constant 1.000000e+00 : f32
    %200 = vector.broadcast %cst_61 : f32 to vector<2x32xf32>
    %201 = arith.addf %200, %199 : vector<2x32xf32>
    %202 = arith.divf %200, %201 : vector<2x32xf32>
    %203 = arith.mulf %196, %190 : vector<2x32xf32>
    %204 = arith.addf %184, %203 : vector<2x32xf32>
    %205 = math.tanh %204 : vector<2x32xf32>
    %cst_62 = arith.constant 1.000000e+00 : f32
    %206 = vector.broadcast %cst_62 : f32 to vector<2x32xf32>
    %207 = arith.subf %206, %202 : vector<2x32xf32>
    %208 = arith.mulf %207, %205 : vector<2x32xf32>
    %209 = arith.mulf %202, %177 : vector<2x32xf32>
    %210 = arith.addf %208, %209 : vector<2x32xf32>
    %211 = arith.truncf %210 : vector<2x32xf32> to vector<2x32xbf16>
    %c160 = arith.constant 160 : index
    %c0_63 = arith.constant 0 : index
    %212 = vector.load %arg8[%c160, %c0_63] : memref<256x32xbf16, #tpu.memory_space<vmem>>, vector<32x32xbf16>
    %cst_64 = arith.constant dense<0.000000e+00> : vector<2x32xf32>
    %213 = tpu.matmul %211, %212, %cst_64 {dimension_numbers = #tpu.dot_dimension_numbers<[1], [0], [0], [1], [0, 0, 1, 1], [], []>} : vector<2x32xbf16>, vector<32x32xbf16>, vector<2x32xf32> -> vector<2x32xf32>
    %214 = arith.addf %181, %213 : vector<2x32xf32>
    %215 = vector.extract_strided_slice %8 {offsets = [12, 0], sizes = [2, 32], strides = [1, 1]} : vector<16x32xf32> to vector<2x32xf32>
    %216 = vector.extract_strided_slice %9 {offsets = [12, 0], sizes = [2, 32], strides = [1, 1]} : vector<16x32xf32> to vector<2x32xf32>
    %217 = vector.extract_strided_slice %10 {offsets = [12, 0], sizes = [2, 32], strides = [1, 1]} : vector<16x32xf32> to vector<2x32xf32>
    %218 = arith.truncf %210 : vector<2x32xf32> to vector<2x32xbf16>
    %cst_65 = arith.constant dense<0.000000e+00> : vector<2x32xf32>
    %219 = tpu.matmul %218, %11, %cst_65 {dimension_numbers = #tpu.dot_dimension_numbers<[1], [0], [0], [1], [0, 0, 1, 1], [], []>} : vector<2x32xbf16>, vector<32x32xbf16>, vector<2x32xf32> -> vector<2x32xf32>
    %cst_66 = arith.constant dense<0.000000e+00> : vector<2x32xf32>
    %220 = tpu.matmul %218, %12, %cst_66 {dimension_numbers = #tpu.dot_dimension_numbers<[1], [0], [0], [1], [0, 0, 1, 1], [], []>} : vector<2x32xbf16>, vector<32x32xbf16>, vector<2x32xf32> -> vector<2x32xf32>
    %cst_67 = arith.constant dense<0.000000e+00> : vector<2x32xf32>
    %221 = tpu.matmul %218, %13, %cst_67 {dimension_numbers = #tpu.dot_dimension_numbers<[1], [0], [0], [1], [0, 0, 1, 1], [], []>} : vector<2x32xbf16>, vector<32x32xbf16>, vector<2x32xf32> -> vector<2x32xf32>
    %222 = vector.broadcast %14 : vector<1x32xf32> to vector<2x32xf32>
    %223 = arith.addf %221, %222 : vector<2x32xf32>
    %224 = arith.addf %215, %219 : vector<2x32xf32>
    %225 = arith.negf %224 : vector<2x32xf32>
    %226 = math.exp %225 : vector<2x32xf32>
    %cst_68 = arith.constant 1.000000e+00 : f32
    %227 = vector.broadcast %cst_68 : f32 to vector<2x32xf32>
    %228 = arith.addf %227, %226 : vector<2x32xf32>
    %229 = arith.divf %227, %228 : vector<2x32xf32>
    %230 = arith.addf %216, %220 : vector<2x32xf32>
    %231 = arith.negf %230 : vector<2x32xf32>
    %232 = math.exp %231 : vector<2x32xf32>
    %cst_69 = arith.constant 1.000000e+00 : f32
    %233 = vector.broadcast %cst_69 : f32 to vector<2x32xf32>
    %234 = arith.addf %233, %232 : vector<2x32xf32>
    %235 = arith.divf %233, %234 : vector<2x32xf32>
    %236 = arith.mulf %229, %223 : vector<2x32xf32>
    %237 = arith.addf %217, %236 : vector<2x32xf32>
    %238 = math.tanh %237 : vector<2x32xf32>
    %cst_70 = arith.constant 1.000000e+00 : f32
    %239 = vector.broadcast %cst_70 : f32 to vector<2x32xf32>
    %240 = arith.subf %239, %235 : vector<2x32xf32>
    %241 = arith.mulf %240, %238 : vector<2x32xf32>
    %242 = arith.mulf %235, %210 : vector<2x32xf32>
    %243 = arith.addf %241, %242 : vector<2x32xf32>
    %244 = arith.truncf %243 : vector<2x32xf32> to vector<2x32xbf16>
    %c192 = arith.constant 192 : index
    %c0_71 = arith.constant 0 : index
    %245 = vector.load %arg8[%c192, %c0_71] : memref<256x32xbf16, #tpu.memory_space<vmem>>, vector<32x32xbf16>
    %cst_72 = arith.constant dense<0.000000e+00> : vector<2x32xf32>
    %246 = tpu.matmul %244, %245, %cst_72 {dimension_numbers = #tpu.dot_dimension_numbers<[1], [0], [0], [1], [0, 0, 1, 1], [], []>} : vector<2x32xbf16>, vector<32x32xbf16>, vector<2x32xf32> -> vector<2x32xf32>
    %247 = arith.addf %214, %246 : vector<2x32xf32>
    %248 = vector.extract_strided_slice %8 {offsets = [14, 0], sizes = [2, 32], strides = [1, 1]} : vector<16x32xf32> to vector<2x32xf32>
    %249 = vector.extract_strided_slice %9 {offsets = [14, 0], sizes = [2, 32], strides = [1, 1]} : vector<16x32xf32> to vector<2x32xf32>
    %250 = vector.extract_strided_slice %10 {offsets = [14, 0], sizes = [2, 32], strides = [1, 1]} : vector<16x32xf32> to vector<2x32xf32>
    %251 = arith.truncf %243 : vector<2x32xf32> to vector<2x32xbf16>
    %cst_73 = arith.constant dense<0.000000e+00> : vector<2x32xf32>
    %252 = tpu.matmul %251, %11, %cst_73 {dimension_numbers = #tpu.dot_dimension_numbers<[1], [0], [0], [1], [0, 0, 1, 1], [], []>} : vector<2x32xbf16>, vector<32x32xbf16>, vector<2x32xf32> -> vector<2x32xf32>
    %cst_74 = arith.constant dense<0.000000e+00> : vector<2x32xf32>
    %253 = tpu.matmul %251, %12, %cst_74 {dimension_numbers = #tpu.dot_dimension_numbers<[1], [0], [0], [1], [0, 0, 1, 1], [], []>} : vector<2x32xbf16>, vector<32x32xbf16>, vector<2x32xf32> -> vector<2x32xf32>
    %cst_75 = arith.constant dense<0.000000e+00> : vector<2x32xf32>
    %254 = tpu.matmul %251, %13, %cst_75 {dimension_numbers = #tpu.dot_dimension_numbers<[1], [0], [0], [1], [0, 0, 1, 1], [], []>} : vector<2x32xbf16>, vector<32x32xbf16>, vector<2x32xf32> -> vector<2x32xf32>
    %255 = vector.broadcast %14 : vector<1x32xf32> to vector<2x32xf32>
    %256 = arith.addf %254, %255 : vector<2x32xf32>
    %257 = arith.addf %248, %252 : vector<2x32xf32>
    %258 = arith.negf %257 : vector<2x32xf32>
    %259 = math.exp %258 : vector<2x32xf32>
    %cst_76 = arith.constant 1.000000e+00 : f32
    %260 = vector.broadcast %cst_76 : f32 to vector<2x32xf32>
    %261 = arith.addf %260, %259 : vector<2x32xf32>
    %262 = arith.divf %260, %261 : vector<2x32xf32>
    %263 = arith.addf %249, %253 : vector<2x32xf32>
    %264 = arith.negf %263 : vector<2x32xf32>
    %265 = math.exp %264 : vector<2x32xf32>
    %cst_77 = arith.constant 1.000000e+00 : f32
    %266 = vector.broadcast %cst_77 : f32 to vector<2x32xf32>
    %267 = arith.addf %266, %265 : vector<2x32xf32>
    %268 = arith.divf %266, %267 : vector<2x32xf32>
    %269 = arith.mulf %262, %256 : vector<2x32xf32>
    %270 = arith.addf %250, %269 : vector<2x32xf32>
    %271 = math.tanh %270 : vector<2x32xf32>
    %cst_78 = arith.constant 1.000000e+00 : f32
    %272 = vector.broadcast %cst_78 : f32 to vector<2x32xf32>
    %273 = arith.subf %272, %268 : vector<2x32xf32>
    %274 = arith.mulf %273, %271 : vector<2x32xf32>
    %275 = arith.mulf %268, %243 : vector<2x32xf32>
    %276 = arith.addf %274, %275 : vector<2x32xf32>
    %277 = arith.truncf %276 : vector<2x32xf32> to vector<2x32xbf16>
    %c224 = arith.constant 224 : index
    %c0_79 = arith.constant 0 : index
    %278 = vector.load %arg8[%c224, %c0_79] : memref<256x32xbf16, #tpu.memory_space<vmem>>, vector<32x32xbf16>
    %cst_80 = arith.constant dense<0.000000e+00> : vector<2x32xf32>
    %279 = tpu.matmul %277, %278, %cst_80 {dimension_numbers = #tpu.dot_dimension_numbers<[1], [0], [0], [1], [0, 0, 1, 1], [], []>} : vector<2x32xbf16>, vector<32x32xbf16>, vector<2x32xf32> -> vector<2x32xf32>
    %280 = arith.addf %247, %279 : vector<2x32xf32>
    %c0_81 = arith.constant 0 : index
    %c0_82 = arith.constant 0 : index
    %281 = vector.load %arg9[%c0_81, %c0_82] : memref<1x32xf32, #tpu.memory_space<vmem>>, vector<1x32xf32>
    %282 = vector.broadcast %281 : vector<1x32xf32> to vector<2x32xf32>
    %283 = arith.addf %280, %282 : vector<2x32xf32>
    %c0_i32 = arith.constant 0 : i32
    %c9_i32 = arith.constant 9 : i32
    %284 = arith.addi %c0_i32, %c9_i32 : i32
    %c1_i32 = arith.constant 1 : i32
    %285 = scf.for %arg15 = %c0_i32 to %284 step %c1_i32 iter_args(%arg16 = %283) -> (vector<2x32xf32>)  : i32 {
      %cst_92 = arith.constant 0.000000e+00 : f32
      %295 = vector.broadcast %cst_92 : f32 to vector<2x32xf32>
      %296 = arith.maximumf %arg16, %295 : vector<2x32xf32>
      %297 = arith.truncf %296 : vector<2x32xf32> to vector<2x32xbf16>
      %298 = arith.index_cast %arg15 : i32 to index
      %c0_93 = arith.constant 0 : index
      %c0_94 = arith.constant 0 : index
      %299 = vector.load %arg10[%298, %c0_93, %c0_94] : memref<9x32x32xbf16, #tpu.memory_space<vmem>>, vector<1x32x32xbf16>
      %300 = vector.shape_cast %299 : vector<1x32x32xbf16> to vector<32x32xbf16>
      %cst_95 = arith.constant dense<0.000000e+00> : vector<2x32xf32>
      %301 = tpu.matmul %297, %300, %cst_95 {dimension_numbers = #tpu.dot_dimension_numbers<[1], [0], [0], [1], [0, 0, 1, 1], [], []>} : vector<2x32xbf16>, vector<32x32xbf16>, vector<2x32xf32> -> vector<2x32xf32>
      %302 = arith.index_cast %arg15 : i32 to index
      %c0_96 = arith.constant 0 : index
      %c0_97 = arith.constant 0 : index
      %303 = vector.load %arg11[%302, %c0_96, %c0_97] : memref<9x1x32xf32, #tpu.memory_space<vmem>>, vector<1x1x32xf32>
      %304 = vector.shape_cast %303 : vector<1x1x32xf32> to vector<1x32xf32>
      %305 = vector.broadcast %304 : vector<1x32xf32> to vector<2x32xf32>
      %306 = arith.addf %301, %305 : vector<2x32xf32>
      scf.yield %306 : vector<2x32xf32>
    }
    %c9_i32_83 = arith.constant 9 : i32
    %cst_84 = arith.constant 0.000000e+00 : f32
    %286 = vector.broadcast %cst_84 : f32 to vector<2x32xf32>
    %287 = arith.maximumf %285, %286 : vector<2x32xf32>
    %288 = arith.truncf %287 : vector<2x32xf32> to vector<2x32xbf16>
    %c0_85 = arith.constant 0 : index
    %c0_86 = arith.constant 0 : index
    %289 = vector.load %arg12[%c0_85, %c0_86] : memref<32x1xbf16, #tpu.memory_space<vmem>>, vector<32x1xbf16>
    %cst_87 = arith.constant dense<0.000000e+00> : vector<2x1xf32>
    %290 = tpu.matmul %288, %289, %cst_87 {dimension_numbers = #tpu.dot_dimension_numbers<[1], [0], [0], [1], [0, 0, 1, 1], [], []>} : vector<2x32xbf16>, vector<32x1xbf16>, vector<2x1xf32> -> vector<2x1xf32>
    %c0_88 = arith.constant 0 : index
    %c0_89 = arith.constant 0 : index
    %291 = vector.load %arg13[%c0_88, %c0_89] : memref<1x1xf32, #tpu.memory_space<vmem>>, vector<1x1xf32>
    %292 = vector.broadcast %291 : vector<1x1xf32> to vector<2x1xf32>
    %293 = arith.addf %290, %292 : vector<2x1xf32>
    %c0_90 = arith.constant 0 : index
    %c0_91 = arith.constant 0 : index
    %294 = vector.load %arg14[%c0_90, %c0_91] : memref<2x1xf32, #tpu.memory_space<vmem>>, vector<2x1xf32>
    tpu.vector_store %arg14[%c0_90, %c0_91], %293 {strides = array<i32>} : memref<2x1xf32, #tpu.memory_space<vmem>>, vector<2x1xf32>,
    return
  }
  func.func @transform_0(%arg0: i32) -> (i32, i32, i32) {
    %c0_i32 = arith.constant 0 : i32
    %c0_i32_0 = arith.constant 0 : i32
    %c0_i32_1 = arith.constant 0 : i32
    return %c0_i32, %arg0, %c0_i32_0 : i32, i32, i32
  }
  func.func @transform_1(%arg0: i32) -> (i32, i32) {
    %c0_i32 = arith.constant 0 : i32
    %c0_i32_0 = arith.constant 0 : i32
    %c0_i32_1 = arith.constant 0 : i32
    return %c0_i32, %c0_i32_0 : i32, i32
  }
  func.func @transform_2(%arg0: i32) -> (i32, i32) {
    %c0_i32 = arith.constant 0 : i32
    %c0_i32_0 = arith.constant 0 : i32
    %c0_i32_1 = arith.constant 0 : i32
    return %c0_i32, %c0_i32_0 : i32, i32
  }
  func.func @transform_3(%arg0: i32) -> (i32, i32) {
    %c0_i32 = arith.constant 0 : i32
    %c0_i32_0 = arith.constant 0 : i32
    %c0_i32_1 = arith.constant 0 : i32
    return %c0_i32, %c0_i32_0 : i32, i32
  }
  func.func @transform_4(%arg0: i32) -> (i32, i32) {
    %c0_i32 = arith.constant 0 : i32
    %c0_i32_0 = arith.constant 0 : i32
    %c0_i32_1 = arith.constant 0 : i32
    return %c0_i32, %c0_i32_0 : i32, i32
  }
  func.func @transform_5(%arg0: i32) -> (i32, i32) {
    %c0_i32 = arith.constant 0 : i32
    %c0_i32_0 = arith.constant 0 : i32
    %c0_i32_1 = arith.constant 0 : i32
    return %c0_i32, %c0_i32_0 : i32, i32
  }
  func.func @transform_6(%arg0: i32) -> (i32, i32) {
    %c0_i32 = arith.constant 0 : i32
    %c0_i32_0 = arith.constant 0 : i32
    %c0_i32_1 = arith.constant 0 : i32
    return %c0_i32, %c0_i32_0 : i32, i32
  }
  func.func @transform_7(%arg0: i32) -> (i32, i32) {
    %c0_i32 = arith.constant 0 : i32
    %c0_i32_0 = arith.constant 0 : i32
    %c0_i32_1 = arith.constant 0 : i32
    return %c0_i32, %c0_i32_0 : i32, i32
  }
  func.func @transform_8(%arg0: i32) -> (i32, i32) {
    %c0_i32 = arith.constant 0 : i32
    %c0_i32_0 = arith.constant 0 : i32
    %c0_i32_1 = arith.constant 0 : i32
    return %c0_i32, %c0_i32_0 : i32, i32
  }
  func.func @transform_9(%arg0: i32) -> (i32, i32, i32) {
    %c0_i32 = arith.constant 0 : i32
    %c0_i32_0 = arith.constant 0 : i32
    %c0_i32_1 = arith.constant 0 : i32
    %c0_i32_2 = arith.constant 0 : i32
    return %c0_i32, %c0_i32_0, %c0_i32_1 : i32, i32, i32
  }
  func.func @transform_10(%arg0: i32) -> (i32, i32, i32) {
    %c0_i32 = arith.constant 0 : i32
    %c0_i32_0 = arith.constant 0 : i32
    %c0_i32_1 = arith.constant 0 : i32
    %c0_i32_2 = arith.constant 0 : i32
    return %c0_i32, %c0_i32_0, %c0_i32_1 : i32, i32, i32
  }
  func.func @transform_11(%arg0: i32) -> (i32, i32) {
    %c0_i32 = arith.constant 0 : i32
    %c0_i32_0 = arith.constant 0 : i32
    %c0_i32_1 = arith.constant 0 : i32
    return %c0_i32, %c0_i32_0 : i32, i32
  }
  func.func @transform_12(%arg0: i32) -> (i32, i32) {
    %c0_i32 = arith.constant 0 : i32
    %c0_i32_0 = arith.constant 0 : i32
    %c0_i32_1 = arith.constant 0 : i32
    return %c0_i32, %c0_i32_0 : i32, i32
  }
  func.func @transform_13(%arg0: i32) -> (i32, i32) {
    %c0_i32 = arith.constant 0 : i32
    %c0_i32_0 = arith.constant 0 : i32
    return %arg0, %c0_i32 : i32, i32
  }
}

</mosaic_0001>

<bundles_post_ra>
// kernel: gru_forecaster.1
= control target key start
LH: loop header
LB: loop body
LE: loop exit
PB: predicated region body
PF: predicated region fallthrough
CT: control target
= control target key end

     0   :  { %s3528_s0 = inlined_call_operand.vmem [shape: f32[8,2,4], index: 0, kind: input, shape index: {}]   ;;  %s3529_s1 = inlined_call_operand.vmem [shape: bf16[4,96], index: 1, kind: input, shape index: {}]   ;;  %s3530_s2 = inlined_call_operand.vmem [shape: f32[1,96], index: 2, kind: input, shape index: {}]   ;;  %s3531_s3 = inlined_call_operand.vmem [shape: bf16[32,32], index: 3, kind: input, shape index: {}]   ;;  %s3532_s4 = inlined_call_operand.vmem [shape: bf16[32,32], index: 4, kind: input, shape index: {}]   ;;  %s3533_s5 = inlined_call_operand.vmem [shape: bf16[32,32], index: 5, kind: input, shape index: {}]   ;;  %s3534_s6 = inlined_call_operand.hbm [shape: f32[1,32], index: 6, kind: input, shape index: {}]   ;;  %s3535_s7 = inlined_call_operand.vmem [shape: bf16[256,32], index: 7, kind: input, shape index: {}]   ;;  %s3536_s8 = inlined_call_operand.hbm [shape: f32[1,32], index: 8, kind: input, shape index: {}]   ;;  %s3537_s9 = inlined_call_operand.vmem [shape: bf16[9,32,32], index: 9, kind: input, shape index: {}]   ;;  %s3538_s10 = inlined_call_operand.hbm [shape: f32[9,1,32], index: 10, kind: input, shape index: {}]   ;;  %s3539_s11 = inlined_call_operand.vmem [shape: bf16[32,1], index: 11, kind: input, shape index: {}]   ;;  %s3540_s12 = inlined_call_operand.<no memory space> [shape: f32[1,1], index: 12, kind: input, shape index: {}]   ;;  %s3541_s13 = inlined_call_operand.vmem [shape: f32[2,1], index: 13, kind: output, shape index: {}]  }
   0x1   :  { %v18_v0 = vstv %s3540_s12 }
   0x2   :  { %19 = vst [vmem:[#allocation2] sm:$0x1] %v18_v0 }
   0x3   :  { %20 = vsyncpa [#allocation4], 0 }
   0x4   :  { %21 = vsyncpa [#allocation6], 0  ;;  %s2923_s27 = smov [#allocation5]   ;;  %s2924_s29 = smov [#allocation3]  }
   0x5   :  { %s52_s28 = sshll.u32 %s2923_s27, 4  ;;  %s40_s30 = sshll.u32 %s2924_s29, 4  ;;  %s53_s28 = int_to_ptr.vmem [resolvable:$true] %s52_s28  ;;  %s41_s30 = int_to_ptr.vmem [resolvable:$true] %s40_s30 }
   0x6   :  { %s2837_s16 = scalar_lea.hbm %s3536_s8, 16 }
   0x7   :  { %p2838_p0 = scmp.ne.s32.totalorder %s3536_s8, %s2837_s16  ;;  %p2841_p1 = scmp.lt.u32.totalorder %s2837_s16, %s3536_s8 }
   0x9   :  { %p2843_p2 = pnand %p2841_p1, %p2838_p0 }
   0xb   :  { %2846 = shalt.err (!%p2843_p2)
}
   0xc   :  { %s2847_s12 = scalar_lea.vmem %s53_s28, 16  ;;  %s2851_s21 = scalar_lea.vmem %s53_s28, 32 }
   0xd   :  { %p2848_p3 = scmp.ne.s32.totalorder %s53_s28, %s2847_s12  ;;  %p2852_p4 = scmp.lt.s32.totalorder %s53_s28, %s53_s28 }
   0xe   :  { %p2853_p5 = scmp.lt.s32.totalorder %s2851_s21, %s2847_s12 }
  0x10   :  { %p2854_p6 = por %p2853_p5, %p2852_p4 }
  0x12   :  { %p2855_p7 = pnand %p2854_p6, %p2848_p3 }
  0x14   :  { %2858 = shalt.err (!%p2855_p7)
}
  0x15   :  { %55 = dma.hbm_to_vmem [thread:$0]  %s3536_s8, 16, %s53_s28, [#allocation6]  }
  0x16   :  { %s2859_s26 = scalar_lea.hbm %s3534_s6, 16 }
  0x17   :  { %p2860_p8 = scmp.ne.s32.totalorder %s3534_s6, %s2859_s26  ;;  %p2863_p9 = scmp.lt.u32.totalorder %s2859_s26, %s3534_s6 }
  0x19   :  { %p2865_p10 = pnand %p2863_p9, %p2860_p8 }
  0x1b   :  { %2868 = shalt.err (!%p2865_p10)
}
  0x1c   :  { %s2869_s16 = scalar_lea.vmem %s41_s30, 16  ;;  %s2873_s17 = scalar_lea.vmem %s41_s30, 32 }
  0x1d   :  { %p2870_p11 = scmp.ne.s32.totalorder %s41_s30, %s2869_s16  ;;  %p2874_p12 = scmp.lt.s32.totalorder %s41_s30, %s41_s30 }
  0x1e   :  { %p2875_p13 = scmp.lt.s32.totalorder %s2873_s17, %s2869_s16 }
  0x20   :  { %p2876_p0 = por %p2875_p13, %p2874_p12 }
  0x22   :  { %p2877_p1 = pnand %p2876_p0, %p2870_p11 }
  0x24   :  { %2880 = shalt.err (!%p2877_p1)
}
  0x25   :  { %43 = dma.hbm_to_vmem [thread:$0]  %s3534_s6, 16, %s41_s30, [#allocation4]  }
  0x26   :  { %s2925_s18 = smov [#allocation7]   ;;  %s2881_s21 = scalar_lea.hbm %s3538_s10, 144 }
  0x27   :  { %s63_s19 = sshll.u32 %s2925_s18, 4  ;;  %p2882_p2 = scmp.ne.s32.totalorder %s3538_s10, %s2881_s21  ;;  %s64_s19 = int_to_ptr.vmem [resolvable:$true] %s63_s19 }
  0x28   :  { %p2885_p3 = scmp.lt.u32.totalorder %s2881_s21, %s3538_s10 }
  0x2a   :  { %p2887_p4 = pnand %p2885_p3, %p2882_p2 }
  0x2c   :  { %2890 = shalt.err (!%p2887_p4)
}
  0x2d   :  { %s2891_s26 = scalar_lea.vmem %s64_s19, 144  ;;  %s2895_s6 = scalar_lea.vmem %s64_s19, 160 }
  0x2e   :  { %p2892_p5 = scmp.ne.s32.totalorder %s64_s19, %s2891_s26  ;;  %p2896_p6 = scmp.lt.s32.totalorder %s64_s19, %s64_s19 }
  0x2f   :  { %p2897_p7 = scmp.lt.s32.totalorder %s2895_s6, %s2891_s26 }
  0x31   :  { %p2898_p8 = por %p2897_p7, %p2896_p6 }
  0x33   :  { %p2899_p9 = pnand %p2898_p8, %p2892_p5 }
  0x35   :  { %2902 = shalt.err (!%p2899_p9)
}
  0x36   :  { %s2926_s30 = smov 16   ;;  %s2927_s27 = smov 1  }
  0x37   :  { %69 = dma.hbm_to_vmem [thread:$0]  %s3538_s10, 144, %s64_s19, [#allocation6], %s2926_s30, %s2926_s30, %s2927_s27  }
  0x38   :  { %2911 = dma.done.wait [#allocation4], 16  }
  0x39   :  { %2912 = vsyncadd [#allocation4], 4294967280 }
  0x3a   :  { %2913 = dma.done.wait [#allocation6], 160  }
  0x3b   :  { %2914 = vsyncadd [#allocation6], 4294967136  ;;  %v105_v1 = vlaneseq  ;;  %v2928_v2 = vmov 0.0   ;;  %vm2929_vm0 = vmmov 0   ;;  %v2930_v3 = vmov 1983009808  }
  0x3c   :  { %2422 = vmatprep.subr.bf16.mxu1 %v2928_v2  ;;  %2416 = vmatprep.subr.bf16.mxu0 %v2928_v2  ;;  %v103_v4 = vunpack.c.l.s4 %v2930_v3  ;;  %vm149_vm1 = vcmask 1041408   ;;  %v3055_v7 = vld [vmem:[%s3531_s3] sm:$0xff]   ;;  %v3064_v11 = vld [vmem:[%s3531_s3 + $0x8] sm:$0xff]   ;;  %vm145_vm2 = vcmask 31744   ;;  %v2931_v32 = vmov 0   ;;  %s2933_s12 = smov 32  }
  0x3d   :  { %2418 = vmatprep.mubr.msk.bf16.mxu0 %vm2929_vm0, %v2928_v2  ;;  %2426 = vmatprep.mubr.msk.bf16.mxu1 %vm2929_vm0, %v2928_v2  ;;  %v106_v6 = vshrl.u32 %v105_v1, 7  ;;  %v137_v8 = vld [vmem:[%s3529_s1] sm:$0x3]  ;;  %v85_v13 = vld [vmem:[%s3528_s0 + $0x2] sm:$0x3]  ;;  %v3102_v30 = vld [vmem:[%s3533_s5 + $0x8] sm:$0xff]  }
  0x3e   :  { %v104_v5 = vunpack.c.0.s8 %v103_v4  ;;  %2423 = vmatpush3.bf16.msra.mxu1 %v3055_v7  ;;  %v151_v10 = vsel %vm149_vm1, %v137_v8, 0  ;;  %v84_v12 = vld [vmem:[%s3528_s0] sm:$0x3]  ;;  %v86_v14 = vld [vmem:[%s3528_s0 + $0x4] sm:$0x3]  ;;  %v3116_v35 = vld [vmem:[%s3532_s4 + $0x8] sm:$0xff]  }
  0x3f   :  { %2417 = vmatpush3.bf16.msra.mxu0 %v151_v10  ;;  %2424 = vmatprep.subr.bf16.mxu1 %v2928_v2  ;;  %v87_v15 = vld [vmem:[%s3528_s0 + $0x6] sm:$0x3]  ;;  %v88_v16 = vld [vmem:[%s3528_s0 + $0x8] sm:$0x3]  ;;  %v100_v17 = vcombine.low %v84_v12, %v85_v13  ;;  %v89_v18 = vld [vmem:[%s3528_s0 + $0xa] sm:$0x3] }
  0x40   :  { %v107_v9 = vsub.s32 %v104_v5, %v106_v6  ;;  %v90_v19 = vld [vmem:[%s3528_s0 + $0xc] sm:$0x3]  ;;  %v91_v20 = vld [vmem:[%s3528_s0 + $0xe] sm:$0x3]  ;;  %v101_v21 = vcombine.low %v86_v14, %v87_v15  ;;  %2430 = vmatprep.subr.bf16.mxu0 %v2928_v2  ;;  %v117_v23 = vcombine.low %v88_v16, %v89_v18  ;;  %v3096_v26 = vld [vmem:[%s3533_s5] sm:$0xff]   ;;  %s2934_s1 = smov 96  }
  0x41   :  { %v118_v24 = vcombine.low %v90_v19, %v91_v20  ;;  %v3107_v33 = vld [vmem:[%s3532_s4] sm:$0xff]   ;;  %vm219_vm3 = vcmask 261120   ;;  %v2731_v19 = vld [vmem:[%s3535_s7 + $0x8] sm:$0xff]  }
  0x42   :  { %v108_v22 = vrot.slane %v100_v17, %v107_v9  ;;  %2425 = vmatpush3.bf16.msra.mxu1 %v3064_v11  ;;  %v115_v25 = vrot.slane %v101_v21, %v107_v9  ;;  %v125_v27 = vrot.slane %v117_v23, %v107_v9  ;;  %v2230_v38 = vld [vmem:[%s3530_s2] ss:$0 sm:$0xff]  ;;  %v3146_v59 = vld [vmem:[#allocation3] ss:$0 sm:$0xff]  ;;  %s2932_s2 = smov 64  }
  0x43   :  { %v132_v28 = vrot.slane %v118_v24, %v107_v9  ;;  %2438 = vmatprep.subr.bf16.mxu1 %v2928_v2  ;;  %v2730_v18 = vld [vmem:[%s3535_s7] sm:$0xff]  }
  0x44   :  { %v116_v29 = vcombine.low %v108_v22, %v115_v25 }
  0x45   :  { %v133_v31 = vcombine.low %v125_v27, %v132_v28  ;;  %2427 = vmatmul.mubr.bf16.vlgmr.msra.gmra.mrb[0].mxu1 %v2931_v32 }
  0x46   :  { %2439 = vmatpush3.bf16.msra.mxu1 %v3096_v26  ;;  %2442 = vmatprep.mubr.msk.bf16.mxu1 %vm2929_vm0, %v2928_v2 }
  0x47   :  { %v136_v34 = vpack.c.bf16 %v133_v31, %v116_v29  ;;  %2440 = vmatprep.subr.bf16.mxu1 %v2928_v2 }
  0x49   :  { %2419 = vmatmul.mubr.msk.bf16.vlgmr.msra.gmra.mrb[0].mxu0 %vm145_vm2, %v136_v34 }
  0x4a   :  { %2441 = vmatpush3.bf16.msra.mxu1 %v3102_v30  ;;  %2431 = vmatpush3.bf16.msra.mxu0 %v3107_v33 }
  0x4b   :  { %2432 = vmatprep.subr.bf16.mxu0 %v2928_v2  ;;  %2434 = vmatprep.mubr.msk.bf16.mxu0 %vm2929_vm0, %v2928_v2 }
  0x4c   :  { %2454 = vmatprep.subr.bf16.mxu1 %v2928_v2 }
  0x4d   :  { %2443 = vmatmul.mubr.bf16.vlgmr.msra.gmra.mrb[4].mxu1 %v2931_v32 }
  0x4e   :  { %2433 = vmatpush3.bf16.msra.mxu0 %v3116_v35  ;;  %2455 = vmatpush3.bf16.msra.mxu1 %v3107_v33 }
  0x4f   :  { %2446 = vmatprep.subr.bf16.mxu0 %v2928_v2  ;;  %2456 = vmatprep.subr.bf16.mxu1 %v2928_v2 }
  0x50   :  { %2458 = vmatprep.mubr.msk.bf16.mxu1 %vm2929_vm0, %v2928_v2 }
  0x51   :  { %2435 = vmatmul.mubr.bf16.vlgmr.msra.gmra.mrb[4].mxu0 %v2931_v32 }
  0x52   :  { %2447 = vmatpush3.bf16.msra.mxu0 %v3055_v7  ;;  %2457 = vmatpush3.bf16.msra.mxu1 %v3116_v35 }
  0x53   :  { %2448 = vmatprep.subr.bf16.mxu0 %v2928_v2  ;;  %2450 = vmatprep.mubr.msk.bf16.mxu0 %vm2929_vm0, %v2928_v2 }
  0x54   :  { %2470 = vmatprep.subr.bf16.mxu1 %v2928_v2 }
  0x56   :  { %2449 = vmatpush3.bf16.msra.mxu0 %v3064_v11 }
  0x57   :  { %2462 = vmatprep.subr.bf16.mxu0 %v2928_v2 }
 0x118   :  { %v257_v36 = vpop.f32.mrb[0].mxu1 }
 0x119   :  { %v2428_v37 = vpop.f32.mrb[1].mxu1 }
 0x11a   :  { %v260_v39 = vpop.f32.mrb[2].mxu1 }
 0x11b   :  { %v2429_v40 = vpop.f32.mrb[3].mxu1 }
 0x11c   :  { %v187_v41 = vpop.f32.mrb[0].mxu0 }
 0x11d   :  { %v3141_v42 = vadd.f32 %v2230_v38, %v187_v41  ;;  %v2420_v43 = vpop.f32.mrb[1].mxu0 }
 0x11e   :  { %v190_v44 = vpop.f32.mrb[2].mxu0 }
 0x11f   :  { %v373_v45 = vadd.f32 %v257_v36, %v3141_v42  ;;  %v3144_v46 = vadd.f32 %v2230_v38, %v190_v44  ;;  %v2421_v47 = vpop.f32.mrb[3].mxu0 }
 0x120   :  { %v367_v48 = vpop.f32.mrb[4].mxu1 }
 0x121   :  { %v2239_v49 = vmul.f32 -1.442695, %v373_v45  ;;  %v2444_v50 = vpop.f32.mrb[5].mxu1  ;;  %v368_v60 = vadd.f32 %v3146_v59, %v367_v48 }
 0x122   :  { %v370_v51 = vpop.f32.mrb[6].mxu1 }
 0x123   :  { %2746 = vpow2.f32 %v2239_v49  ;;  %v2445_v52 = vpop.f32.mrb[7].mxu1 }
 0x124   :  { %v309_v53 = vpop.f32.mrb[4].mxu0 }
 0x125   :  { %v2436_v54 = vpop.f32.mrb[5].mxu0 }
 0x126   :  { %v312_v55 = vpop.f32.mrb[6].mxu0  ;;  %v2732_v54 = vld [vmem:[%s3535_s7 + $0x10] sm:$0xff]  }
 0x127   :  { %v2437_v56 = vpop.f32.mrb[7].mxu0  ;;  %v2733_v55 = vld [vmem:[%s3535_s7 + $0x18] sm:$0xff]  }
 0x12d   :  { %v2747_v57 = vpop.eup %2746 }
 0x12e   :  { %v377_v58 = vadd.f32 1.0, %v2747_v57 }
 0x130   :  { %2748 = vrcp.f32 %v377_v58 }
 0x13a   :  { %v2749_v61 = vpop.eup %2748 }
 0x13b   :  { %v391_v62 = vmul.f32 %v2749_v61, %v368_v60 }
 0x13d   :  { %393 = vrot.lane.b32.xlu0 %v391_v62, %s2932_s2 }
 0x141   :  { %381 = vrot.lane.b32.xlu0 %v309_v53, %s2933_s12 }
 0x1af   :  { %v394_v63 = vpop.permute.xlu0 %393 }
 0x1b0   :  { %v396_v0 = vadd.f32 %v394_v63, %v3141_v42 }
 0x1b2   :  { %2750 = vtanh.f32 %v396_v0 }
 0x1b3   :  { %v382_v3 = vpop.permute.xlu0 %381 }
 0x1b4   :  { %v384_v4 = vadd.f32 %v382_v3, %v3141_v42 }
 0x1b6   :  { %v2240_v5 = vmul.f32 -1.442695, %v384_v4 }
 0x1b8   :  { %2752 = vpow2.f32 %v2240_v5 }
 0x1bc   :  { %v2751_v1 = vpop.eup %2750 }
 0x1bd   :  { %400 = vrot.lane.b32.xlu1 %v2751_v1, %s2934_s1 }
 0x1c2   :  { %v2753_v6 = vpop.eup %2752 }
 0x1c3   :  { %v388_v8 = vadd.f32 1.0, %v2753_v6 }
 0x1c5   :  { %2754 = vrcp.f32 %v388_v8 }
 0x1cf   :  { %v2755_v9 = vpop.eup %2754 }
 0x1d0   :  { %v398_v10 = vsub.f32 1.0, %v2755_v9  ;;  %v404_v14 = vmul.f32 0.0, %v2755_v9 }
 0x22f   :  { %v401_v12 = vpop.permute.xlu1 %400 }
 0x230   :  { %v403_v13 = vmul.f32 %v401_v12, %v398_v10 }
 0x232   :  { %v3154_v15 = vadd.f32 %v404_v14, %v403_v13 }
 0x234   :  { %v406_v16 = vpack.c.bf16 %v3154_v15, %v3154_v15  ;;  %v576_v0 = vrot.slane %v3154_v15, 6 }
 0x236   :  { %412 = vrot.lane.b32.xlu1 %v406_v16, %s2934_s1 }
 0x2a8   :  { %v413_v17 = vpop.permute.xlu1 %412 }
 0x2a9   :  { %2451 = vmatmul.mubr.msk.bf16.vlgmr.msra.gmra.mrb[8].mxu0 %vm219_vm3, %v413_v17  ;;  %2459 = vmatmul.mubr.msk.bf16.vlgmr.msra.gmra.mrb[8].mxu1 %vm219_vm3, %v413_v17 }
 0x2aa   :  { %2463 = vmatpush3.bf16.msra.mxu0 %v3096_v26  ;;  %2466 = vmatprep.mubr.msk.bf16.mxu0 %vm2929_vm0, %v2928_v2 }
 0x2ab   :  { %2464 = vmatprep.subr.bf16.mxu0 %v2928_v2  ;;  %2474 = vmatprep.mubr.msk.bf16.mxu1 %vm2929_vm0, %v2928_v2 }
 0x2ac   :  { %2471 = vmatpush3.bf16.msra.mxu1 %v2732_v54 }
 0x2ad   :  { %2472 = vmatprep.subr.bf16.mxu1 %v2928_v2 }
 0x2ae   :  { %2465 = vmatpush3.bf16.msra.mxu0 %v3102_v30 }
 0x2af   :  { %2478 = vmatprep.subr.bf16.mxu0 %v2928_v2 }
 0x2b0   :  { %2473 = vmatpush3.bf16.msra.mxu1 %v2733_v55 }
 0x2b1   :  { %2467 = vmatmul.mubr.msk.bf16.vlgmr.msra.gmra.mrb[12].mxu0 %vm219_vm3, %v413_v17  ;;  %2486 = vmatprep.subr.bf16.mxu1 %v2928_v2 }
 0x2b2   :  { %2479 = vmatpush3.bf16.msra.mxu0 %v2730_v18  ;;  %2482 = vmatprep.mubr.msk.bf16.mxu0 %vm2929_vm0, %v2928_v2 }
 0x2b3   :  { %2480 = vmatprep.subr.bf16.mxu0 %v2928_v2 }
 0x2b6   :  { %2481 = vmatpush3.bf16.msra.mxu0 %v2731_v19 }
 0x2b7   :  { %2494 = vmatprep.subr.bf16.mxu0 %v2928_v2 }
 0x2b9   :  { %2483 = vmatmul.mubr.msk.bf16.vlgmr.msra.gmra.mrb[16].mxu0 %vm219_vm3, %v413_v17 }
 0x2ba   :  { %2495 = vmatpush3.bf16.msra.mxu0 %v3107_v33  ;;  %2498 = vmatprep.mubr.msk.bf16.mxu0 %vm2929_vm0, %v2928_v2 }
 0x2bb   :  { %2496 = vmatprep.subr.bf16.mxu0 %v2928_v2 }
 0x2be   :  { %2497 = vmatpush3.bf16.msra.mxu0 %v3116_v35 }
 0x2bf   :  { %2510 = vmatprep.subr.bf16.mxu0 %v2928_v2 }
 0x37c   :  { %v451_v20 = vpop.f32.mrb[8].mxu0  ;;  %v491_v21 = vpop.f32.mrb[8].mxu1 }
 0x37d   :  { %v538_v22 = vrot.slane %v451_v20, 6  ;;  %v548_v23 = vrot.slane %v491_v21, 6  ;;  %v2452_v24 = vpop.f32.mrb[9].mxu0  ;;  %v2460_v25 = vpop.f32.mrb[9].mxu1 }
 0x37e   :  { %v454_v27 = vpop.f32.mrb[10].mxu0  ;;  %v494_v28 = vpop.f32.mrb[10].mxu1 }
 0x37f   :  { %v540_v29 = vadd.f32 %v538_v22, %v3141_v42  ;;  %549 = vrot.lane.b32.xlu1 %v548_v23, %s2933_s12  ;;  %v2453_v31 = vpop.f32.mrb[11].mxu0  ;;  %v2461_v32 = vpop.f32.mrb[11].mxu1 }
 0x381   :  { %v2244_v34 = vmul.f32 -1.442695, %v540_v29 }
 0x383   :  { %2756 = vpow2.f32 %v2244_v34 }
 0x384   :  { %v531_v36 = vpop.f32.mrb[12].mxu0 }
 0x385   :  { %v2468_v37 = vpop.f32.mrb[13].mxu0  ;;  %v532_v48 = vadd.f32 %v3146_v59, %v531_v36 }
 0x386   :  { %v534_v38 = vpop.f32.mrb[14].mxu0 }
 0x387   :  { %v2469_v39 = vpop.f32.mrb[15].mxu0  ;;  %v560_v49 = vrot.slane %v532_v48, 6  ;;  %v2735_v48 = vld [vmem:[%s3535_s7 + $0x28] sm:$0xff]  }
 0x38c   :  { %v3189_v40 = vpop.f32.mrb[16].mxu0 }
 0x38d   :  { %v2757_v41 = vpop.eup %2756  ;;  %v2484_v43 = vpop.f32.mrb[17].mxu0 }
 0x38e   :  { %v544_v44 = vadd.f32 1.0, %v2757_v41  ;;  %v693_v45 = vpop.f32.mrb[18].mxu0 }
 0x38f   :  { %v2485_v47 = vpop.f32.mrb[19].mxu0 }
 0x390   :  { %2758 = vrcp.f32 %v544_v44  ;;  %v2734_v47 = vld [vmem:[%s3535_s7 + $0x20] sm:$0xff]  }
 0x39a   :  { %v2759_v50 = vpop.eup %2758 }
 0x39b   :  { %v562_v51 = vmul.f32 %v2759_v50, %v560_v49 }
 0x39d   :  { %564 = vrot.lane.b32.xlu0 %v562_v51, %s2932_s2 }
 0x3f1   :  { %v550_v57 = vpop.permute.xlu1 %549 }
 0x3f2   :  { %v552_v58 = vadd.f32 %v550_v57, %v3141_v42 }
 0x3f4   :  { %v2245_v60 = vmul.f32 -1.442695, %v552_v58 }
 0x40f   :  { %v565_v52 = vpop.permute.xlu0 %564 }
 0x410   :  { %v567_v53 = vadd.f32 %v565_v52, %v3141_v42 }
 0x412   :  { %2760 = vtanh.f32 %v567_v53 }
 0x413   :  { %2762 = vpow2.f32 %v2245_v60 }
 0x41c   :  { %v2761_v56 = vpop.eup %2760 }
 0x41d   :  { %571 = vrot.lane.b32.xlu0 %v2761_v56, %s2934_s1  ;;  %v2763_v61 = vpop.eup %2762 }
 0x41e   :  { %v556_v62 = vadd.f32 1.0, %v2763_v61 }
 0x420   :  { %2764 = vrcp.f32 %v556_v62 }
 0x42a   :  { %v2765_v63 = vpop.eup %2764 }
 0x42b   :  { %v569_v1 = vsub.f32 1.0, %v2765_v63  ;;  %v578_v4 = vmul.f32 %v2765_v63, %v576_v0 }
 0x48f   :  { %v572_v3 = vpop.permute.xlu0 %571 }
 0x490   :  { %v574_v5 = vmul.f32 %v572_v3, %v569_v1 }
 0x492   :  { %v3205_v6 = vadd.f32 %v578_v4, %v574_v5 }
 0x494   :  { %v580_v8 = vpack.c.bf16 %v3205_v6, %v3205_v6  ;;  %v855_v56 = vrot.slane %v3205_v6, 6 }
 0x496   :  { %v586_v9 = vrot.slane %v580_v8, 1 }
 0x498   :  { %587 = vrot.lane.b32.xlu1 %v586_v9, %s2934_s1 }
 0x50a   :  { %v588_v10 = vpop.permute.xlu1 %587 }
 0x50b   :  { %2475 = vmatmul.mubr.msk.bf16.vlgmr.msra.gmra.mrb[12].mxu1 %vm219_vm3, %v588_v10  ;;  %2499 = vmatmul.mubr.msk.bf16.vlgmr.msra.gmra.mrb[20].mxu0 %vm219_vm3, %v588_v10 }
 0x50c   :  { %2487 = vmatpush3.bf16.msra.mxu1 %v3055_v7  ;;  %2490 = vmatprep.mubr.msk.bf16.mxu1 %vm2929_vm0, %v2928_v2 }
 0x50d   :  { %2488 = vmatprep.subr.bf16.mxu1 %v2928_v2  ;;  %2514 = vmatprep.mubr.msk.bf16.mxu0 %vm2929_vm0, %v2928_v2 }
 0x50e   :  { %2511 = vmatpush3.bf16.msra.mxu0 %v2734_v47 }
 0x50f   :  { %2512 = vmatprep.subr.bf16.mxu0 %v2928_v2 }
 0x510   :  { %2489 = vmatpush3.bf16.msra.mxu1 %v3064_v11 }
 0x511   :  { %2502 = vmatprep.subr.bf16.mxu1 %v2928_v2 }
 0x512   :  { %2513 = vmatpush3.bf16.msra.mxu0 %v2735_v48 }
 0x513   :  { %2491 = vmatmul.mubr.msk.bf16.vlgmr.msra.gmra.mrb[16].mxu1 %vm219_vm3, %v588_v10  ;;  %2526 = vmatprep.subr.bf16.mxu0 %v2928_v2 }
 0x514   :  { %2503 = vmatpush3.bf16.msra.mxu1 %v3096_v26  ;;  %2506 = vmatprep.mubr.msk.bf16.mxu1 %vm2929_vm0, %v2928_v2 }
 0x515   :  { %2504 = vmatprep.subr.bf16.mxu1 %v2928_v2 }
 0x518   :  { %2505 = vmatpush3.bf16.msra.mxu1 %v3102_v30 }
 0x519   :  { %2518 = vmatprep.subr.bf16.mxu1 %v2928_v2 }
 0x51b   :  { %2507 = vmatmul.mubr.msk.bf16.vlgmr.msra.gmra.mrb[20].mxu1 %vm219_vm3, %v588_v10 }
 0x51c   :  { %2519 = vmatpush3.bf16.msra.mxu1 %v3055_v7  ;;  %2522 = vmatprep.mubr.msk.bf16.mxu1 %vm2929_vm0, %v2928_v2 }
 0x51d   :  { %2520 = vmatprep.subr.bf16.mxu1 %v2928_v2 }
 0x520   :  { %2521 = vmatpush3.bf16.msra.mxu1 %v3064_v11 }
 0x521   :  { %2534 = vmatprep.subr.bf16.mxu1 %v2928_v2 }
 0x5de   :  { %v638_v12 = vpop.f32.mrb[12].mxu1  ;;  %v770_v13 = vpop.f32.mrb[20].mxu0 }
 0x5df   :  { %v3235_v14 = vadd.f32 %v3189_v40, %v638_v12  ;;  %v827_v15 = vrot.slane %v770_v13, 4  ;;  %v2476_v16 = vpop.f32.mrb[13].mxu1  ;;  %v2500_v17 = vpop.f32.mrb[21].mxu0 }
 0x5e0   :  { %v641_v18 = vpop.f32.mrb[14].mxu1  ;;  %v773_v19 = vpop.f32.mrb[22].mxu0 }
 0x5e1   :  { %v2477_v20 = vpop.f32.mrb[15].mxu1  ;;  %828 = vrot.lane.b32.xlu1 %v827_v15, %s2933_s12  ;;  %v2501_v21 = vpop.f32.mrb[23].mxu0 }
 0x5e6   :  { %v730_v22 = vpop.f32.mrb[16].mxu1 }
 0x5e7   :  { %v817_v23 = vrot.slane %v730_v22, 4  ;;  %v2492_v24 = vpop.f32.mrb[17].mxu1 }
 0x5e8   :  { %v733_v25 = vpop.f32.mrb[18].mxu1 }
 0x5e9   :  { %v819_v27 = vadd.f32 %v817_v23, %v3141_v42  ;;  %v2493_v28 = vpop.f32.mrb[19].mxu1 }
 0x5eb   :  { %v2255_v29 = vmul.f32 -1.442695, %v819_v27 }
 0x5ed   :  { %2766 = vpow2.f32 %v2255_v29 }
 0x5ee   :  { %v810_v31 = vpop.f32.mrb[20].mxu1 }
 0x5ef   :  { %v2508_v32 = vpop.f32.mrb[21].mxu1  ;;  %v811_v39 = vadd.f32 %v3146_v59, %v810_v31 }
 0x5f0   :  { %v813_v34 = vpop.f32.mrb[22].mxu1 }
 0x5f1   :  { %v2509_v36 = vpop.f32.mrb[23].mxu1  ;;  %v839_v40 = vrot.slane %v811_v39, 4  ;;  %v2737_v39 = vld [vmem:[%s3535_s7 + $0x38] sm:$0xff]  }
 0x5f7   :  { %v2767_v37 = vpop.eup %2766 }
 0x5f8   :  { %v823_v38 = vadd.f32 1.0, %v2767_v37 }
 0x5fa   :  { %2768 = vrcp.f32 %v823_v38  ;;  %v2736_v38 = vld [vmem:[%s3535_s7 + $0x30] sm:$0xff]  }
 0x604   :  { %v2769_v41 = vpop.eup %2768 }
 0x605   :  { %v841_v43 = vmul.f32 %v2769_v41, %v839_v40 }
 0x607   :  { %843 = vrot.lane.b32.xlu0 %v841_v43, %s2932_s2 }
 0x653   :  { %v829_v50 = vpop.permute.xlu1 %828 }
 0x654   :  { %v831_v51 = vadd.f32 %v829_v50, %v3141_v42 }
 0x656   :  { %v2256_v52 = vmul.f32 -1.442695, %v831_v51 }
 0x679   :  { %v844_v44 = vpop.permute.xlu0 %843 }
 0x67a   :  { %v846_v45 = vadd.f32 %v844_v44, %v3141_v42 }
 0x67c   :  { %2770 = vtanh.f32 %v846_v45 }
 0x67d   :  { %2772 = vpow2.f32 %v2256_v52 }
 0x686   :  { %v2771_v49 = vpop.eup %2770 }
 0x687   :  { %850 = vrot.lane.b32.xlu0 %v2771_v49, %s2934_s1  ;;  %v2773_v53 = vpop.eup %2772 }
 0x688   :  { %v835_v54 = vadd.f32 1.0, %v2773_v53 }
 0x68a   :  { %2774 = vrcp.f32 %v835_v54 }
 0x694   :  { %v2775_v55 = vpop.eup %2774 }
 0x695   :  { %v848_v57 = vsub.f32 1.0, %v2775_v55  ;;  %v857_v61 = vmul.f32 %v2775_v55, %v855_v56 }
 0x6f9   :  { %v851_v58 = vpop.permute.xlu0 %850 }
 0x6fa   :  { %v853_v60 = vmul.f32 %v851_v58, %v848_v57 }
 0x6fc   :  { %v3253_v62 = vadd.f32 %v857_v61, %v853_v60 }
 0x6fe   :  { %v859_v63 = vpack.c.bf16 %v3253_v62, %v3253_v62  ;;  %v1083_v49 = vrot.slane %v3253_v62, 6 }
 0x700   :  { %v865_v0 = vrot.slane %v859_v63, 2 }
 0x702   :  { %866 = vrot.lane.b32.xlu1 %v865_v0, %s2934_s1 }
 0x774   :  { %v867_v1 = vpop.permute.xlu1 %866 }
 0x775   :  { %2515 = vmatmul.mubr.msk.bf16.vlgmr.msra.gmra.mrb[24].mxu0 %vm219_vm3, %v867_v1  ;;  %2523 = vmatmul.mubr.msk.bf16.vlgmr.msra.gmra.mrb[24].mxu1 %vm219_vm3, %v867_v1 }
 0x776   :  { %2527 = vmatpush3.bf16.msra.mxu0 %v3107_v33  ;;  %2535 = vmatpush3.bf16.msra.mxu1 %v3096_v26 }
 0x777   :  { %2528 = vmatprep.subr.bf16.mxu0 %v2928_v2  ;;  %2536 = vmatprep.subr.bf16.mxu1 %v2928_v2 }
 0x778   :  { %2530 = vmatprep.mubr.msk.bf16.mxu0 %vm2929_vm0, %v2928_v2  ;;  %2538 = vmatprep.mubr.msk.bf16.mxu1 %vm2929_vm0, %v2928_v2 }
 0x77a   :  { %2529 = vmatpush3.bf16.msra.mxu0 %v3116_v35  ;;  %2537 = vmatpush3.bf16.msra.mxu1 %v3102_v30 }
 0x77b   :  { %2550 = vmatprep.subr.bf16.mxu1 %v2928_v2  ;;  %2542 = vmatprep.subr.bf16.mxu0 %v2928_v2 }
 0x77d   :  { %2531 = vmatmul.mubr.msk.bf16.vlgmr.msra.gmra.mrb[28].mxu0 %vm219_vm3, %v867_v1  ;;  %2539 = vmatmul.mubr.msk.bf16.vlgmr.msra.gmra.mrb[28].mxu1 %vm219_vm3, %v867_v1 }
 0x77e   :  { %2551 = vmatpush3.bf16.msra.mxu1 %v3055_v7  ;;  %2546 = vmatprep.mubr.msk.bf16.mxu0 %vm2929_vm0, %v2928_v2 }
 0x77f   :  { %2552 = vmatprep.subr.bf16.mxu1 %v2928_v2  ;;  %2554 = vmatprep.mubr.msk.bf16.mxu1 %vm2929_vm0, %v2928_v2 }
 0x780   :  { %2543 = vmatpush3.bf16.msra.mxu0 %v2736_v38 }
 0x781   :  { %2544 = vmatprep.subr.bf16.mxu0 %v2928_v2 }
 0x782   :  { %2553 = vmatpush3.bf16.msra.mxu1 %v3064_v11 }
 0x783   :  { %2566 = vmatprep.subr.bf16.mxu1 %v2928_v2 }
 0x784   :  { %2545 = vmatpush3.bf16.msra.mxu0 %v2737_v39 }
 0x785   :  { %2558 = vmatprep.subr.bf16.mxu0 %v2928_v2 }
 0x848   :  { %v917_v3 = vpop.f32.mrb[24].mxu0  ;;  %v958_v4 = vpop.f32.mrb[24].mxu1 }
 0x849   :  { %v3283_v5 = vadd.f32 %v917_v3, %v3235_v14  ;;  %v1045_v6 = vrot.slane %v958_v4, 2  ;;  %v2516_v8 = vpop.f32.mrb[25].mxu0  ;;  %v2524_v9 = vpop.f32.mrb[25].mxu1 }
 0x84a   :  { %v920_v10 = vpop.f32.mrb[26].mxu0  ;;  %v961_v12 = vpop.f32.mrb[26].mxu1 }
 0x84b   :  { %v1047_v13 = vadd.f32 %v1045_v6, %v3141_v42  ;;  %v2517_v15 = vpop.f32.mrb[27].mxu0  ;;  %v2525_v16 = vpop.f32.mrb[27].mxu1 }
 0x84d   :  { %v2263_v17 = vmul.f32 -1.442695, %v1047_v13 }
 0x84f   :  { %2776 = vpow2.f32 %v2263_v17 }
 0x850   :  { %v998_v18 = vpop.f32.mrb[28].mxu0  ;;  %v1038_v19 = vpop.f32.mrb[28].mxu1 }
 0x851   :  { %v1055_v20 = vrot.slane %v998_v18, 2  ;;  %v2532_v21 = vpop.f32.mrb[29].mxu0  ;;  %v2540_v22 = vpop.f32.mrb[29].mxu1  ;;  %v1039_v29 = vadd.f32 %v3146_v59, %v1038_v19 }
 0x852   :  { %v1001_v23 = vpop.f32.mrb[30].mxu0  ;;  %v1041_v24 = vpop.f32.mrb[30].mxu1 }
 0x853   :  { %v2541_v14 = vpop.f32.mrb[31].mxu1  ;;  %1056 = vrot.lane.b32.xlu1 %v1055_v20, %s2933_s12  ;;  %v2533_v25 = vpop.f32.mrb[31].mxu0  ;;  %v1067_v31 = vrot.slane %v1039_v29, 2  ;;  %v2738_v24 = vld [vmem:[%s3535_s7 + $0x40] sm:$0xff]  }
 0x854   :  { %v2739_v14 = vld [vmem:[%s3535_s7 + $0x48] sm:$0xff]  }
 0x859   :  { %v2777_v27 = vpop.eup %2776 }
 0x85a   :  { %v1051_v28 = vadd.f32 1.0, %v2777_v27 }
 0x85c   :  { %2778 = vrcp.f32 %v1051_v28 }
 0x866   :  { %v2779_v32 = vpop.eup %2778 }
 0x867   :  { %v1069_v34 = vmul.f32 %v2779_v32, %v1067_v31 }
 0x869   :  { %1071 = vrot.lane.b32.xlu0 %v1069_v34, %s2932_s2 }
 0x8c5   :  { %v1057_v41 = vpop.permute.xlu1 %1056 }
 0x8c6   :  { %v1059_v43 = vadd.f32 %v1057_v41, %v3141_v42 }
 0x8c8   :  { %v2264_v44 = vmul.f32 -1.442695, %v1059_v43 }
 0x8db   :  { %v1072_v36 = vpop.permute.xlu0 %1071 }
 0x8dc   :  { %v1074_v37 = vadd.f32 %v1072_v36, %v3141_v42 }
 0x8de   :  { %2780 = vtanh.f32 %v1074_v37 }
 0x8df   :  { %2782 = vpow2.f32 %v2264_v44 }
 0x8e8   :  { %v2781_v40 = vpop.eup %2780 }
 0x8e9   :  { %1078 = vrot.lane.b32.xlu0 %v2781_v40, %s2934_s1  ;;  %v2783_v45 = vpop.eup %2782 }
 0x8ea   :  { %v1063_v47 = vadd.f32 1.0, %v2783_v45 }
 0x8ec   :  { %2784 = vrcp.f32 %v1063_v47 }
 0x8f6   :  { %v2785_v48 = vpop.eup %2784 }
 0x8f7   :  { %v1076_v50 = vsub.f32 1.0, %v2785_v48  ;;  %v1085_v53 = vmul.f32 %v2785_v48, %v1083_v49 }
 0x95b   :  { %v1079_v51 = vpop.permute.xlu0 %1078 }
 0x95c   :  { %v1081_v52 = vmul.f32 %v1079_v51, %v1076_v50 }
 0x95e   :  { %v3301_v54 = vadd.f32 %v1085_v53, %v1081_v52 }
 0x960   :  { %v1087_v55 = vpack.c.bf16 %v3301_v54, %v3301_v54  ;;  %v1304_v36 = vrot.slane %v3301_v54, 6 }
 0x962   :  { %v1093_v56 = vrot.slane %v1087_v55, 3 }
 0x964   :  { %1094 = vrot.lane.b32.xlu1 %v1093_v56, %s2934_s1 }
 0x9d6   :  { %v1095_v42 = vpop.permute.xlu1 %1094 }
 0x9d7   :  { %2547 = vmatmul.mubr.msk.bf16.vlgmr.msra.gmra.mrb[32].mxu0 %vm219_vm3, %v1095_v42  ;;  %2555 = vmatmul.mubr.msk.bf16.vlgmr.msra.gmra.mrb[32].mxu1 %vm219_vm3, %v1095_v42 }
 0x9d8   :  { %2559 = vmatpush3.bf16.msra.mxu0 %v3107_v33  ;;  %2567 = vmatpush3.bf16.msra.mxu1 %v3096_v26 }
 0x9d9   :  { %2560 = vmatprep.subr.bf16.mxu0 %v2928_v2  ;;  %2568 = vmatprep.subr.bf16.mxu1 %v2928_v2 }
 0x9da   :  { %2562 = vmatprep.mubr.msk.bf16.mxu0 %vm2929_vm0, %v2928_v2  ;;  %2570 = vmatprep.mubr.msk.bf16.mxu1 %vm2929_vm0, %v2928_v2 }
 0x9dc   :  { %2561 = vmatpush3.bf16.msra.mxu0 %v3116_v35  ;;  %2569 = vmatpush3.bf16.msra.mxu1 %v3102_v30 }
 0x9dd   :  { %2582 = vmatprep.subr.bf16.mxu1 %v2928_v2  ;;  %2574 = vmatprep.subr.bf16.mxu0 %v2928_v2 }
 0x9df   :  { %2563 = vmatmul.mubr.msk.bf16.vlgmr.msra.gmra.mrb[36].mxu0 %vm219_vm3, %v1095_v42  ;;  %2571 = vmatmul.mubr.msk.bf16.vlgmr.msra.gmra.mrb[36].mxu1 %vm219_vm3, %v1095_v42 }
 0x9e0   :  { %2583 = vmatpush3.bf16.msra.mxu1 %v3055_v7  ;;  %2578 = vmatprep.mubr.msk.bf16.mxu0 %vm2929_vm0, %v2928_v2 }
 0x9e1   :  { %2584 = vmatprep.subr.bf16.mxu1 %v2928_v2  ;;  %2586 = vmatprep.mubr.msk.bf16.mxu1 %vm2929_vm0, %v2928_v2 }
 0x9e2   :  { %2575 = vmatpush3.bf16.msra.mxu0 %v2738_v24 }
 0x9e3   :  { %2576 = vmatprep.subr.bf16.mxu0 %v2928_v2 }
 0x9e4   :  { %2585 = vmatpush3.bf16.msra.mxu1 %v3064_v11 }
 0x9e5   :  { %2598 = vmatprep.subr.bf16.mxu1 %v2928_v2 }
 0x9e6   :  { %2577 = vmatpush3.bf16.msra.mxu0 %v2739_v14 }
 0x9e7   :  { %2590 = vmatprep.subr.bf16.mxu0 %v2928_v2 }
 0xaaa   :  { %v1145_v57 = vpop.f32.mrb[32].mxu0  ;;  %v1186_v58 = vpop.f32.mrb[32].mxu1 }
 0xaab   :  { %v3331_v60 = vadd.f32 %v1145_v57, %v3283_v5  ;;  %v1272_v61 = vadd.f32 %v1186_v58, %v3144_v46  ;;  %v2548_v62 = vpop.f32.mrb[33].mxu0  ;;  %v2556_v63 = vpop.f32.mrb[33].mxu1 }
 0xaac   :  { %v1148_v0 = vpop.f32.mrb[34].mxu0  ;;  %v1189_v1 = vpop.f32.mrb[34].mxu1 }
 0xaad   :  { %v2271_v3 = vmul.f32 -1.442695, %v1272_v61  ;;  %v2549_v4 = vpop.f32.mrb[35].mxu0  ;;  %v2557_v6 = vpop.f32.mrb[35].mxu1 }
 0xaaf   :  { %2786 = vpow2.f32 %v2271_v3 }
 0xab2   :  { %v1226_v8 = vpop.f32.mrb[36].mxu0  ;;  %v1266_v9 = vpop.f32.mrb[36].mxu1 }
 0xab3   :  { %v2572_v10 = vpop.f32.mrb[37].mxu1  ;;  %1280 = vrot.lane.b32.xlu1 %v1226_v8, %s2933_s12  ;;  %v2564_v12 = vpop.f32.mrb[37].mxu0  ;;  %v1267_v19 = vadd.f32 %v3146_v59, %v1266_v9  ;;  %v2740_v9 = vld [vmem:[%s3535_s7 + $0x50] sm:$0xff]  }
 0xab4   :  { %v1229_v13 = vpop.f32.mrb[38].mxu0  ;;  %v1269_v15 = vpop.f32.mrb[38].mxu1  ;;  %v2741_v10 = vld [vmem:[%s3535_s7 + $0x58] sm:$0xff]  }
 0xab5   :  { %v2565_v5 = vpop.f32.mrb[39].mxu0  ;;  %v2573_v16 = vpop.f32.mrb[39].mxu1 }
 0xab9   :  { %v2787_v17 = vpop.eup %2786 }
 0xaba   :  { %v1276_v18 = vadd.f32 1.0, %v2787_v17 }
 0xabc   :  { %2788 = vrcp.f32 %v1276_v18 }
 0xac6   :  { %v2789_v20 = vpop.eup %2788 }
 0xac7   :  { %v1290_v21 = vmul.f32 %v2789_v20, %v1267_v19 }
 0xac9   :  { %1292 = vrot.lane.b32.xlu0 %v1290_v21, %s2932_s2 }
 0xb25   :  { %v1281_v27 = vpop.permute.xlu1 %1280 }
 0xb26   :  { %v1283_v28 = vadd.f32 %v1281_v27, %v3144_v46 }
 0xb28   :  { %v2272_v29 = vmul.f32 -1.442695, %v1283_v28  ;;  %v3407_v28 = vld [vmem:[%s3532_s4] sm:$0xff]  }
 0xb3b   :  { %v1293_v22 = vpop.permute.xlu0 %1292 }
 0xb3c   :  { %v1295_v23 = vadd.f32 %v1293_v22, %v3144_v46 }
 0xb3e   :  { %2790 = vtanh.f32 %v1295_v23 }
 0xb3f   :  { %2792 = vpow2.f32 %v2272_v29  ;;  %v3413_v29 = vld [vmem:[%s3533_s5] sm:$0xff]  }
 0xb48   :  { %v2791_v25 = vpop.eup %2790 }
 0xb49   :  { %1299 = vrot.lane.b32.xlu0 %v2791_v25, %s2934_s1  ;;  %v2793_v31 = vpop.eup %2792 }
 0xb4a   :  { %v1287_v32 = vadd.f32 1.0, %v2793_v31  ;;  %v3426_v31 = vld [vmem:[%s3533_s5 + $0x8] sm:$0xff]  }
 0xb4c   :  { %2794 = vrcp.f32 %v1287_v32  ;;  %v2829_v32 = vld [vmem:[%s3531_s3] sm:$0xff]  }
 0xb56   :  { %v2795_v34 = vpop.eup %2794 }
 0xb57   :  { %v1297_v37 = vsub.f32 1.0, %v2795_v34  ;;  %v1306_v40 = vmul.f32 %v2795_v34, %v1304_v36 }
 0xbbb   :  { %v1300_v38 = vpop.permute.xlu0 %1299 }
 0xbbc   :  { %v1302_v39 = vmul.f32 %v1300_v38, %v1297_v37 }
 0xbbe   :  { %v3349_v41 = vadd.f32 %v1306_v40, %v1302_v39 }
 0xbc0   :  { %v1308_v43 = vpack.c.bf16 %v3349_v41, %v3349_v41  ;;  %v1531_v19 = vrot.slane %v3349_v41, 6 }
 0xbc2   :  { %1314 = vrot.lane.b32.xlu1 %v1308_v43, %s2934_s1 }
 0xc34   :  { %v1315_v44 = vpop.permute.xlu1 %1314 }
 0xc35   :  { %2579 = vmatmul.mubr.msk.bf16.vlgmr.msra.gmra.mrb[40].mxu0 %vm219_vm3, %v1315_v44  ;;  %2587 = vmatmul.mubr.msk.bf16.vlgmr.msra.gmra.mrb[40].mxu1 %vm219_vm3, %v1315_v44 }
 0xc36   :  { %2591 = vmatpush3.bf16.msra.mxu0 %v3107_v33  ;;  %2599 = vmatpush3.bf16.msra.mxu1 %v3096_v26 }
 0xc37   :  { %2592 = vmatprep.subr.bf16.mxu0 %v2928_v2  ;;  %2600 = vmatprep.subr.bf16.mxu1 %v2928_v2 }
 0xc38   :  { %2594 = vmatprep.mubr.msk.bf16.mxu0 %vm2929_vm0, %v2928_v2  ;;  %2602 = vmatprep.mubr.msk.bf16.mxu1 %vm2929_vm0, %v2928_v2 }
 0xc3a   :  { %2593 = vmatpush3.bf16.msra.mxu0 %v3116_v35  ;;  %2601 = vmatpush3.bf16.msra.mxu1 %v3102_v30 }
 0xc3b   :  { %2614 = vmatprep.subr.bf16.mxu1 %v2928_v2  ;;  %2606 = vmatprep.subr.bf16.mxu0 %v2928_v2 }
 0xc3d   :  { %2595 = vmatmul.mubr.msk.bf16.vlgmr.msra.gmra.mrb[44].mxu0 %vm219_vm3, %v1315_v44  ;;  %2603 = vmatmul.mubr.msk.bf16.vlgmr.msra.gmra.mrb[44].mxu1 %vm219_vm3, %v1315_v44 }
 0xc3e   :  { %2615 = vmatpush3.bf16.msra.mxu1 %v3055_v7  ;;  %2610 = vmatprep.mubr.msk.bf16.mxu0 %vm2929_vm0, %v2928_v2 }
 0xc3f   :  { %2616 = vmatprep.subr.bf16.mxu1 %v2928_v2  ;;  %2618 = vmatprep.mubr.msk.bf16.mxu1 %vm2929_vm0, %v2928_v2 }
 0xc40   :  { %2607 = vmatpush3.bf16.msra.mxu0 %v2740_v9 }
 0xc41   :  { %2608 = vmatprep.subr.bf16.mxu0 %v2928_v2 }
 0xc42   :  { %2617 = vmatpush3.bf16.msra.mxu1 %v3064_v11 }
 0xc43   :  { %2630 = vmatprep.subr.bf16.mxu1 %v2928_v2 }
 0xc44   :  { %2609 = vmatpush3.bf16.msra.mxu0 %v2741_v10 }
 0xc45   :  { %2622 = vmatprep.subr.bf16.mxu0 %v2928_v2 }
 0xd08   :  { %v1365_v26 = vpop.f32.mrb[40].mxu0  ;;  %v1406_v30 = vpop.f32.mrb[40].mxu1 }
 0xd09   :  { %v3379_v33 = vadd.f32 %v1365_v26, %v3331_v60  ;;  %v1493_v45 = vrot.slane %v1406_v30, 6  ;;  %v2580_v47 = vpop.f32.mrb[41].mxu0  ;;  %v2588_v7 = vpop.f32.mrb[41].mxu1 }
 0xd0a   :  { %v1368_v48 = vpop.f32.mrb[42].mxu0  ;;  %v1409_v49 = vpop.f32.mrb[42].mxu1 }
 0xd0b   :  { %v1495_v50 = vadd.f32 %v1493_v45, %v3144_v46  ;;  %v2581_v51 = vpop.f32.mrb[43].mxu0  ;;  %v2589_v52 = vpop.f32.mrb[43].mxu1 }
 0xd0d   :  { %v2279_v53 = vmul.f32 -1.442695, %v1495_v50 }
 0xd0f   :  { %2796 = vpow2.f32 %v2279_v53 }
 0xd10   :  { %v1446_v54 = vpop.f32.mrb[44].mxu0  ;;  %v1486_v11 = vpop.f32.mrb[44].mxu1 }
 0xd11   :  { %v1503_v55 = vrot.slane %v1446_v54, 6  ;;  %v2596_v56 = vpop.f32.mrb[45].mxu0  ;;  %v2604_v42 = vpop.f32.mrb[45].mxu1  ;;  %v1487_v0 = vadd.f32 %v3146_v59, %v1486_v11 }
 0xd12   :  { %v1449_v57 = vpop.f32.mrb[46].mxu0  ;;  %v1489_v58 = vpop.f32.mrb[46].mxu1 }
 0xd13   :  { %v2605_v60 = vpop.f32.mrb[47].mxu1  ;;  %1504 = vrot.lane.b32.xlu1 %v1503_v55, %s2933_s12  ;;  %v2597_v61 = vpop.f32.mrb[47].mxu0  ;;  %v1515_v1 = vrot.slane %v1487_v0, 6 }
 0xd14   :  { %v2742_v61 = vld [vmem:[%s3535_s7 + $0x60] sm:$0xff]  }
 0xd19   :  { %v2797_v62 = vpop.eup %2796 }
 0xd1a   :  { %v1499_v63 = vadd.f32 1.0, %v2797_v62  ;;  %v2743_v62 = vld [vmem:[%s3535_s7 + $0x68] sm:$0xff]  }
 0xd1c   :  { %2798 = vrcp.f32 %v1499_v63 }
 0xd26   :  { %v2799_v3 = vpop.eup %2798 }
 0xd27   :  { %v1517_v4 = vmul.f32 %v2799_v3, %v1515_v1 }
 0xd29   :  { %1519 = vrot.lane.b32.xlu0 %v1517_v4, %s2932_s2 }
 0xd85   :  { %v1505_v13 = vpop.permute.xlu1 %1504 }
 0xd86   :  { %v1507_v15 = vadd.f32 %v1505_v13, %v3144_v46 }
 0xd88   :  { %v2280_v5 = vmul.f32 -1.442695, %v1507_v15 }
 0xd9b   :  { %v1520_v6 = vpop.permute.xlu0 %1519 }
 0xd9c   :  { %v1522_v8 = vadd.f32 %v1520_v6, %v3144_v46 }
 0xd9e   :  { %2800 = vtanh.f32 %v1522_v8 }
 0xd9f   :  { %2802 = vpow2.f32 %v2280_v5 }
 0xda8   :  { %v2801_v12 = vpop.eup %2800 }
 0xda9   :  { %1526 = vrot.lane.b32.xlu0 %v2801_v12, %s2934_s1  ;;  %v2803_v16 = vpop.eup %2802 }
 0xdaa   :  { %v1511_v17 = vadd.f32 1.0, %v2803_v16 }
 0xdac   :  { %2804 = vrcp.f32 %v1511_v17 }
 0xdb6   :  { %v2805_v18 = vpop.eup %2804 }
 0xdb7   :  { %v1524_v20 = vsub.f32 1.0, %v2805_v18  ;;  %v1533_v23 = vmul.f32 %v2805_v18, %v1531_v19  ;;  %v2831_v18 = vld [vmem:[%s3532_s4 + $0x8] sm:$0xff]  }
 0xe1b   :  { %v1527_v21 = vpop.permute.xlu0 %1526 }
 0xe1c   :  { %v1529_v22 = vmul.f32 %v1527_v21, %v1524_v20 }
 0xe1e   :  { %v3397_v24 = vadd.f32 %v1533_v23, %v1529_v22 }
 0xe20   :  { %v1535_v14 = vpack.c.bf16 %v3397_v24, %v3397_v24  ;;  %v1759_v8 = vrot.slane %v3397_v24, 6 }
 0xe22   :  { %v1541_v25 = vrot.slane %v1535_v14, 1 }
 0xe24   :  { %1542 = vrot.lane.b32.xlu1 %v1541_v25, %s2934_s1 }
 0xe96   :  { %v1543_v27 = vpop.permute.xlu1 %1542 }
 0xe97   :  { %2611 = vmatmul.mubr.msk.bf16.vlgmr.msra.gmra.mrb[48].mxu0 %vm219_vm3, %v1543_v27  ;;  %2619 = vmatmul.mubr.msk.bf16.vlgmr.msra.gmra.mrb[48].mxu1 %vm219_vm3, %v1543_v27 }
 0xe98   :  { %2623 = vmatpush3.bf16.msra.mxu0 %v3407_v28  ;;  %2631 = vmatpush3.bf16.msra.mxu1 %v3413_v29 }
 0xe99   :  { %2624 = vmatprep.subr.bf16.mxu0 %v2928_v2  ;;  %2632 = vmatprep.subr.bf16.mxu1 %v2928_v2 }
 0xe9a   :  { %2626 = vmatprep.mubr.msk.bf16.mxu0 %vm2929_vm0, %v2928_v2  ;;  %2634 = vmatprep.mubr.msk.bf16.mxu1 %vm2929_vm0, %v2928_v2 }
 0xe9c   :  { %2625 = vmatpush3.bf16.msra.mxu0 %v3116_v35  ;;  %2633 = vmatpush3.bf16.msra.mxu1 %v3426_v31  ;;  %v2830_v35 = vld [vmem:[%s3531_s3 + $0x8] sm:$0xff]  }
 0xe9d   :  { %2646 = vmatprep.subr.bf16.mxu1 %v2928_v2  ;;  %2638 = vmatprep.subr.bf16.mxu0 %v2928_v2 }
 0xe9f   :  { %2627 = vmatmul.mubr.msk.bf16.vlgmr.msra.gmra.mrb[52].mxu0 %vm219_vm3, %v1543_v27  ;;  %2635 = vmatmul.mubr.msk.bf16.vlgmr.msra.gmra.mrb[52].mxu1 %vm219_vm3, %v1543_v27 }
 0xea0   :  { %2647 = vmatpush3.bf16.msra.mxu1 %v2829_v32  ;;  %2642 = vmatprep.mubr.msk.bf16.mxu0 %vm2929_vm0, %v2928_v2 }
 0xea1   :  { %2648 = vmatprep.subr.bf16.mxu1 %v2928_v2  ;;  %2650 = vmatprep.mubr.msk.bf16.mxu1 %vm2929_vm0, %v2928_v2 }
 0xea2   :  { %2639 = vmatpush3.bf16.msra.mxu0 %v2742_v61 }
 0xea3   :  { %2640 = vmatprep.subr.bf16.mxu0 %v2928_v2 }
 0xea4   :  { %2649 = vmatpush3.bf16.msra.mxu1 %v2830_v35 }
 0xea5   :  { %2662 = vmatprep.subr.bf16.mxu1 %v2928_v2 }
 0xea6   :  { %2641 = vmatpush3.bf16.msra.mxu0 %v2743_v62 }
 0xea7   :  { %2654 = vmatprep.subr.bf16.mxu0 %v2928_v2 }
 0xf6a   :  { %v1593_v34 = vpop.f32.mrb[48].mxu0  ;;  %v1634_v36 = vpop.f32.mrb[48].mxu1 }
 0xf6b   :  { %v3446_v37 = vadd.f32 %v1593_v34, %v3379_v33  ;;  %v1721_v38 = vrot.slane %v1634_v36, 4  ;;  %v2612_v39 = vpop.f32.mrb[49].mxu0  ;;  %v2620_v40 = vpop.f32.mrb[49].mxu1 }
 0xf6c   :  { %v1596_v41 = vpop.f32.mrb[50].mxu0  ;;  %v1637_v43 = vpop.f32.mrb[50].mxu1 }
 0xf6d   :  { %v1723_v44 = vadd.f32 %v1721_v38, %v3144_v46  ;;  %v2613_v26 = vpop.f32.mrb[51].mxu0  ;;  %v2621_v30 = vpop.f32.mrb[51].mxu1 }
 0xf6e   :  { %v2832_v26 = vld [vmem:[#allocation3] ss:$0 sm:$0xff] }
 0xf6f   :  { %v2287_v45 = vmul.f32 -1.442695, %v1723_v44 }
 0xf71   :  { %2806 = vpow2.f32 %v2287_v45 }
 0xf72   :  { %v1674_v47 = vpop.f32.mrb[52].mxu0  ;;  %v1714_v7 = vpop.f32.mrb[52].mxu1 }
 0xf73   :  { %v1731_v48 = vrot.slane %v1674_v47, 4  ;;  %v2628_v49 = vpop.f32.mrb[53].mxu0  ;;  %v2636_v50 = vpop.f32.mrb[53].mxu1  ;;  %v1715_v55 = vadd.f32 %v3146_v59, %v1714_v7 }
 0xf74   :  { %v1677_v51 = vpop.f32.mrb[54].mxu0  ;;  %v1717_v52 = vpop.f32.mrb[54].mxu1  ;;  %v2744_v50 = vld [vmem:[%s3535_s7 + $0x70] sm:$0xff]  }
 0xf75   :  { %v2637_v33 = vpop.f32.mrb[55].mxu1  ;;  %1732 = vrot.lane.b32.xlu1 %v1731_v48, %s2933_s12  ;;  %v2629_v53 = vpop.f32.mrb[55].mxu0  ;;  %v1743_v56 = vrot.slane %v1715_v55, 4  ;;  %v2745_v51 = vld [vmem:[%s3535_s7 + $0x78] sm:$0xff]   ;;  %s3505_s7 = smov 0  }
 0xf7b   :  { %v2807_v54 = vpop.eup %2806 }
 0xf7c   :  { %v1727_v11 = vadd.f32 1.0, %v2807_v54 }
 0xf7e   :  { %2808 = vrcp.f32 %v1727_v11 }
 0xf88   :  { %v2809_v42 = vpop.eup %2808 }
 0xf89   :  { %v1745_v57 = vmul.f32 %v2809_v42, %v1743_v56 }
 0xf8b   :  { %1747 = vrot.lane.b32.xlu0 %v1745_v57, %s2932_s2 }
 0xfe7   :  { %v1733_v63 = vpop.permute.xlu1 %1732 }
 0xfe8   :  { %v1735_v0 = vadd.f32 %v1733_v63, %v3144_v46 }
 0xfea   :  { %v2288_v1 = vmul.f32 -1.442695, %v1735_v0 }
 0xffd   :  { %v1748_v58 = vpop.permute.xlu0 %1747 }
 0xffe   :  { %v1750_v60 = vadd.f32 %v1748_v58, %v3144_v46 }
0x1000   :  { %2810 = vtanh.f32 %v1750_v60 }
0x1001   :  { %2812 = vpow2.f32 %v2288_v1  ;;  %v2300_v1 = vld [vmem:[#allocation5] ss:$0 sm:$0xff] }
0x100a   :  { %v2811_v59 = vpop.eup %2810 }
0x100b   :  { %1754 = vrot.lane.b32.xlu0 %v2811_v59, %s2934_s1  ;;  %v2813_v3 = vpop.eup %2812 }
0x100c   :  { %v1739_v4 = vadd.f32 1.0, %v2813_v3 }
0x100e   :  { %2814 = vrcp.f32 %v1739_v4 }
0x1018   :  { %v2815_v6 = vpop.eup %2814 }
0x1019   :  { %v1752_v9 = vsub.f32 1.0, %v2815_v6  ;;  %v1761_v13 = vmul.f32 %v2815_v6, %v1759_v8 }
0x107d   :  { %v1755_v10 = vpop.permute.xlu0 %1754 }
0x107e   :  { %v1757_v12 = vmul.f32 %v1755_v10, %v1752_v9 }
0x1080   :  { %v3464_v15 = vadd.f32 %v1761_v13, %v1757_v12 }
0x1082   :  { %v1763_v5 = vpack.c.bf16 %v3464_v15, %v3464_v15  ;;  %v1987_v42 = vrot.slane %v3464_v15, 6 }
0x1084   :  { %v1769_v16 = vrot.slane %v1763_v5, 2 }
0x1086   :  { %1770 = vrot.lane.b32.xlu1 %v1769_v16, %s2934_s1 }
0x10f8   :  { %v1771_v17 = vpop.permute.xlu1 %1770 }
0x10f9   :  { %2643 = vmatmul.mubr.msk.bf16.vlgmr.msra.gmra.mrb[56].mxu0 %vm219_vm3, %v1771_v17  ;;  %2651 = vmatmul.mubr.msk.bf16.vlgmr.msra.gmra.mrb[56].mxu1 %vm219_vm3, %v1771_v17 }
0x10fa   :  { %2655 = vmatpush3.bf16.msra.mxu0 %v3407_v28  ;;  %2663 = vmatpush3.bf16.msra.mxu1 %v3413_v29 }
0x10fb   :  { %2656 = vmatprep.subr.bf16.mxu0 %v2928_v2  ;;  %2664 = vmatprep.subr.bf16.mxu1 %v2928_v2 }
0x10fc   :  { %2658 = vmatprep.mubr.msk.bf16.mxu0 %vm2929_vm0, %v2928_v2  ;;  %2666 = vmatprep.mubr.msk.bf16.mxu1 %vm2929_vm0, %v2928_v2 }
0x10fe   :  { %2657 = vmatpush3.bf16.msra.mxu0 %v2831_v18  ;;  %2665 = vmatpush3.bf16.msra.mxu1 %v3426_v31 }
0x10ff   :  { %2670 = vmatprep.subr.bf16.mxu0 %v2928_v2 }
0x1101   :  { %2659 = vmatmul.mubr.msk.bf16.vlgmr.msra.gmra.mrb[60].mxu0 %vm219_vm3, %v1771_v17  ;;  %2667 = vmatmul.mubr.msk.bf16.vlgmr.msra.gmra.mrb[60].mxu1 %vm219_vm3, %v1771_v17 }
0x1102   :  { %2674 = vmatprep.mubr.msk.bf16.mxu0 %vm2929_vm0, %v2928_v2  ;;  %2671 = vmatpush3.bf16.msra.mxu0 %v2744_v50 }
0x1103   :  { %2672 = vmatprep.subr.bf16.mxu0 %v2928_v2 }
0x1106   :  { %2673 = vmatpush3.bf16.msra.mxu0 %v2745_v51 }
0x11cc   :  { %v1821_v19 = vpop.f32.mrb[56].mxu0  ;;  %v1862_v20 = vpop.f32.mrb[56].mxu1 }
0x11cd   :  { %v1827_v21 = vadd.f32 %v1821_v19, %v3446_v37  ;;  %v1949_v22 = vrot.slane %v1862_v20, 2  ;;  %v2644_v23 = vpop.f32.mrb[57].mxu0  ;;  %v2652_v24 = vpop.f32.mrb[57].mxu1 }
0x11ce   :  { %v1824_v14 = vpop.f32.mrb[58].mxu0  ;;  %v1865_v25 = vpop.f32.mrb[58].mxu1 }
0x11cf   :  { %v1951_v27 = vadd.f32 %v1949_v22, %v3144_v46  ;;  %v2645_v28 = vpop.f32.mrb[59].mxu0  ;;  %v2653_v29 = vpop.f32.mrb[59].mxu1 }
0x11d1   :  { %v2295_v31 = vmul.f32 -1.442695, %v1951_v27 }
0x11d3   :  { %2816 = vpow2.f32 %v2295_v31 }
0x11d4   :  { %v1902_v32 = vpop.f32.mrb[60].mxu0  ;;  %v1942_v35 = vpop.f32.mrb[60].mxu1 }
0x11d5   :  { %v1959_v34 = vrot.slane %v1902_v32, 2  ;;  %v2660_v36 = vpop.f32.mrb[61].mxu0  ;;  %v2668_v38 = vpop.f32.mrb[61].mxu1  ;;  %v1943_v30 = vadd.f32 %v2832_v26, %v1942_v35 }
0x11d6   :  { %v1905_v39 = vpop.f32.mrb[62].mxu0  ;;  %v1945_v40 = vpop.f32.mrb[62].mxu1 }
0x11d7   :  { %v2669_v41 = vpop.f32.mrb[63].mxu1  ;;  %1960 = vrot.lane.b32.xlu1 %v1959_v34, %s2933_s12  ;;  %v2661_v37 = vpop.f32.mrb[63].mxu0  ;;  %v1971_v45 = vrot.slane %v1943_v30, 2 }
0x11dd   :  { %v2817_v43 = vpop.eup %2816 }
0x11de   :  { %v1955_v44 = vadd.f32 1.0, %v2817_v43 }
0x11e0   :  { %2818 = vrcp.f32 %v1955_v44 }
0x11ea   :  { %v2819_v47 = vpop.eup %2818 }
0x11eb   :  { %v1973_v7 = vmul.f32 %v2819_v47, %v1971_v45 }
0x11ed   :  { %1975 = vrot.lane.b32.xlu0 %v1973_v7, %s2932_s2 }
0x1249   :  { %v1961_v33 = vpop.permute.xlu1 %1960 }
0x124a   :  { %v1963_v53 = vadd.f32 %v1961_v33, %v3144_v46 }
0x124c   :  { %v2296_v54 = vmul.f32 -1.442695, %v1963_v53 }
0x125f   :  { %v1976_v48 = vpop.permute.xlu0 %1975 }
0x1260   :  { %v1978_v49 = vadd.f32 %v1976_v48, %v3144_v46 }
0x1262   :  { %2820 = vtanh.f32 %v1978_v49 }
0x1263   :  { %2822 = vpow2.f32 %v2296_v54 }
0x126c   :  { %v2821_v52 = vpop.eup %2820 }
0x126d   :  { %1982 = vrot.lane.b32.xlu0 %v2821_v52, %s2934_s1  ;;  %v2823_v11 = vpop.eup %2822 }
0x126e   :  { %v1967_v55 = vadd.f32 1.0, %v2823_v11 }
0x1270   :  { %2824 = vrcp.f32 %v1967_v55 }
0x127a   :  { %v2825_v56 = vpop.eup %2824 }
0x127b   :  { %v1980_v57 = vsub.f32 1.0, %v2825_v56  ;;  %v1989_v61 = vmul.f32 %v2825_v56, %v1987_v42 }
0x12df   :  { %v1983_v58 = vpop.permute.xlu0 %1982 }
0x12e0   :  { %v1985_v60 = vmul.f32 %v1983_v58, %v1980_v57 }
0x12e2   :  { %v1990_v62 = vadd.f32 %v1989_v61, %v1985_v60 }
0x12e4   :  { %v1991_v59 = vpack.c.bf16 %v1990_v62, %v1990_v62 }
0x12e6   :  { %v1997_v63 = vrot.slane %v1991_v59, 3 }
0x12e8   :  { %1998 = vrot.lane.b32.xlu1 %v1997_v63, %s2934_s1 }
0x135a   :  { %v1999_v0 = vpop.permute.xlu1 %1998 }
0x135b   :  { %2675 = vmatmul.mubr.msk.bf16.vlgmr.msra.gmra.mrb[64].mxu0 %vm219_vm3, %v1999_v0 }
0x142e   :  { %v2049_v46 = vpop.f32.mrb[64].mxu0 }
0x142f   :  { %v2055_v3 = vadd.f32 %v2049_v46, %v1827_v21  ;;  %v2676_v4 = vpop.f32.mrb[65].mxu0 }
0x1430   :  { %v2052_v6 = vpop.f32.mrb[66].mxu0 }
0x1431   :  { %v2063_v8 = vadd.f32 %v2300_v1, %v2055_v3   ;;  %v2677_v9 = vpop.f32.mrb[67].mxu0 }
0x1433   :  { %v2915_v10 = vmov %v2063_v8  }
0x1434 LB: > { %v2935_v12 = vmov 0.0   ;;  %vm2936_vm4 = vmmov 0   ;;  %s2311_s2 = sshll.u32 %s2921_s7, 4  ;;  %v2071_v15 = vmax.f32 %v2917_v10, 0.0  ;;  %s2080_s21 = scalar_lea.vmem [#allocation7], %s2921_s7  ;;  %s2921_s7 = sphi %s3505_s7, %s2069_s7   ;;  %v2917_v10 = vphi %v2915_v10, %v2916_v10  }
0x1435   : > { %2678 = vmatprep.subr.bf16.mxu0 %v2935_v12  ;;  %2682 = vmatprep.mubr.msk.bf16.mxu0 %vm2936_vm4, %v2935_v12  ;;  %s2075_s20 = scalar_lea.vmem %s3537_s9, %s2311_s2  ;;  %v2303_v17 = vld [vmem:[%s2080_s21] ss:$0 sm:$0xff]  ;;  %s2069_s7 = sadd.s32 1, %s2921_s7  }
0x1436   : > { %v2833_v13 = vld [vmem:[%s2075_s20] sm:$0xff]   ;;  %v2834_v5 = vld [vmem:[%s2075_s20 + $0x8] sm:$0xff]   ;;  %v2072_v16 = vpack.c.bf16 %v2071_v15, %v2071_v15  ;;  %p2066_p10 = scmp.ge.s32.totalorder %s2069_s7, 9  }
0x1437   : > { %2679 = vmatpush3.bf16.msra.mxu0 %v2833_v13  ;;  %v2835_v23 = vld [vmem:[%s3539_s11] sm:$0xff] (%p2066_p10)   ;;  %v2836_v14 = vld [vmem:[%s3539_s11 + $0x8] sm:$0xff] (%p2066_p10)   ;;  %vm2211_vm5 = vcmask (%p2066_p10), 1024  }
0x1438   : > { %2680 = vmatprep.subr.bf16.mxu0 %v2935_v12  ;;  %v2307_v27 = vld [vmem:[#allocation2] ss:$0 sm:$0xff] (%p2066_p10) }
0x143b   : > { %2681 = vmatpush3.bf16.msra.mxu0 %v2834_v5 }
0x143c   :  { %2686 = vmatprep.subr.bf16.mxu0 (%p2066_p10), %v2928_v2 }
0x143e   : > { %2683 = vmatmul.mubr.msk.bf16.vlgmr.msra.gmra.mrb[0].mxu0 %vm219_vm3, %v2072_v16 }
0x143f   :  { %2690 = vmatprep.mubr.msk.bf16.mxu0 (%p2066_p10), %vm2929_vm0, %v2928_v2  ;;  %2687 = vmatpush3.bf16.msra.mxu0 (%p2066_p10), %v2835_v23 }
0x1440   :  { %2688 = vmatprep.subr.bf16.mxu0 (%p2066_p10), %v2928_v2 }
0x1443   :  { %2689 = vmatpush3.bf16.msra.mxu0 (%p2066_p10), %v2836_v14 }
0x150e   :  { %2068 = sbr.rel (!%p2066_p10) target bundleno = 5172 (0x1434), region = 93 }
0x1511   : > { %v2137_v18 = vpop.f32.mrb[0].mxu0 }
0x1512   : > { %v2138_v19 = vadd.f32 %v2303_v17, %v2137_v18   ;;  %v2684_v20 = vpop.f32.mrb[1].mxu0 }
0x1513   : > { %v2140_v21 = vpop.f32.mrb[2].mxu0 }
0x1514   : > { %v2685_v22 = vpop.f32.mrb[3].mxu0  ;;  %v2916_v10 = vmov %v2138_v19   ;;  %v2143_v24 = vmax.f32 (%p2066_p10), %v2138_v19, 0.0 }
0x1516   :  { %v2144_v25 = vpack.c.bf16 %v2143_v24, %v2143_v24 }
0x1518   :  { %2691 = vmatmul.mubr.msk.bf16.vlgmr.msra.gmra.mrb[0].mxu0 %vm219_vm3, %v2144_v25 }
0x15eb   :  { %v2205_v28 = vpop.f32.mrb[0].mxu0 }
0x15ec   :  { %v2206_v29 = vadd.f32 %v2307_v27, %v2205_v28  ;;  %v2692_v31 = vpop.f32.mrb[1].mxu0 }
0x15ed   :  { %v2208_v32 = vpop.f32.mrb[2].mxu0 }
0x15ee   :  { %2212 = vst.msk [vmem:[%s3541_s13] sm:$0x3] %vm2211_vm5, %v2206_v29  ;;  %v2693_v35 = vpop.f32.mrb[3].mxu0 }
0x15ef   :  { %2217 = vsyncpa [#allocation4], 1 }
0x15f0   :  { %2218 = vsyncpa [#allocation6], 1 }

</bundles_post_ra>
